<compile_context>
chip_gen: v5e
topology: v5e:2x2
jax: 0.10.0
libtpu: 0.0.40
codegen_flags: <defaults>
</compile_context>

<pallas_src>
import functools

import jax
import jax.numpy as jnp
from jax.experimental import pallas as pl
from jax.experimental.pallas import tpu as pltpu


P = 128            # lane padding for weight / descriptor feature dims
TILE_B_MAX = 2048  # query rows per grid step (multiple of 128 when tiled)
EPS2 = 1e-16       # == (1e-8)^2, per-norm clamp like F.cosine_similarity

# V_all row layout (each row is a (1, P) vector; row 9 packs the two scalars).
_ROW_B1, _ROW_B2, _ROW_B3, _ROW_G3, _ROW_H3 = 0, 1, 2, 3, 4
_ROW_BA1, _ROW_WA2, _ROW_BP1, _ROW_WP2, _ROW_SCAL = 5, 6, 7, 8, 9
# W_all row blocks: [w1 | w2(folded BN1) | w3(folded BN2) | wa1 | wp1], each (P, P).


def _round_up(n, m):
    return ((n + m - 1) // m) * m


# ----------------------------------------------------------------------------
# Shared math helpers.  `w_all` / `v_all` may be Pallas Refs (inside kernels,
# sliced lazily) or plain jnp arrays (pure-JAX matched reference).
# ----------------------------------------------------------------------------
def _mm(a, w):
    """MXU matmul: bf16 operands, f32 accumulation."""
    return jnp.dot(a.astype(jnp.bfloat16), w.astype(jnp.bfloat16),
                   preferred_element_type=jnp.float32)


def _descriptors(z, w_all, v_all, in_dim):
    """feature_extractor -> local_descriptor -> attention gate -> weighted descs."""
    w1 = w_all[0:in_dim, :]          # only the valid input rows of the w1 block
    w2 = w_all[1 * P:2 * P, :]
    w3 = w_all[2 * P:3 * P, :]
    wa1 = w_all[3 * P:4 * P, :]
    b1 = v_all[_ROW_B1:_ROW_B1 + 1, :]
    b2 = v_all[_ROW_B2:_ROW_B2 + 1, :]
    b3 = v_all[_ROW_B3:_ROW_B3 + 1, :]
    g3 = v_all[_ROW_G3:_ROW_G3 + 1, :]
    h3 = v_all[_ROW_H3:_ROW_H3 + 1, :]
    ba1 = v_all[_ROW_BA1:_ROW_BA1 + 1, :]
    wa2 = v_all[_ROW_WA2:_ROW_WA2 + 1, :]
    ba2 = v_all[_ROW_SCAL:_ROW_SCAL + 1, 0:1]      # (1, 1)

    # feature_extractor (BN1, BN2 already folded into w2/b2 and w3/b3)
    h = jnp.maximum(_mm(z, w1) + b1, 0.0)
    h = jnp.maximum(_mm(h, w2) + b2, 0.0)
    # local_descriptor (its BN stays explicit: descriptor is consumed directly)
    d = jnp.maximum(_mm(h, w3) + b3, 0.0)
    d = d * g3 + h3
    # attention: (H2->H4) matmul, then VPU multiply + lane reduce for the 1-wide head
    a = jnp.maximum(_mm(d, wa1) + ba1, 0.0)
    gate = jax.nn.sigmoid(jnp.sum(a * wa2, axis=-1, keepdims=True) + ba2)   # (rows, 1)
    return d * gate


def _normalize_rows(d):
    return d * jax.lax.rsqrt(jnp.maximum(jnp.sum(d * d, axis=-1, keepdims=True), EPS2))


def _attend_support(q, sup_b, shat_b, s_valid):
    """Cosine similarity -> softmax(T=10) -> weighted sum of support descriptors.

    q: (rows, P) f32 weighted query descriptors.
    sup_b / shat_b: (s_pad, P) bf16 weighted / row-normalized support descriptors.
    """
    q_hat = _normalize_rows(q).astype(jnp.bfloat16)
    sim = jax.lax.dot_general(q_hat, shat_b,
                              dimension_numbers=(((1,), (1,)), ((), ())),
                              preferred_element_type=jnp.float32)   # (rows, s_pad)
    logits = sim * 10.0
    s_pad = shat_b.shape[0]
    if s_pad != s_valid:
        col = jax.lax.broadcasted_iota(jnp.int32, logits.shape, 1)
        logits = jnp.where(col < s_valid, logits, -1e30)
    m = jnp.max(logits, axis=1, keepdims=True)
    e = jnp.exp(logits - m)
    sm = e / jnp.sum(e, axis=1, keepdims=True)       # exact divide (no approx recip)
    return jnp.dot(sm.astype(jnp.bfloat16), sup_b, preferred_element_type=jnp.float32)


def _predict_row(w, w_all, v_all):
    """Predictor head; returns a lane-dense (1, rows) prediction row (BNp folded)."""
    wp1 = w_all[4 * P:5 * P, :]
    bp1 = v_all[_ROW_BP1:_ROW_BP1 + 1, :]
    wp2 = v_all[_ROW_WP2:_ROW_WP2 + 1, :]            # (1, P) row vector
    bp2 = v_all[_ROW_SCAL:_ROW_SCAL + 1, 1:2]        # (1, 1)
    q = jnp.maximum(_mm(w, wp1) + bp1, 0.0)
    # Contract last dims -> (1, rows): output is lane-dense, no last-dim-1 store.
    pred = jax.lax.dot_general(wp2.astype(jnp.bfloat16), q.astype(jnp.bfloat16),
                               dimension_numbers=(((1,), (1,)), ((), ())),
                               preferred_element_type=jnp.float32)
    return pred + bp2


# ----------------------------------------------------------------------------
# Kernels
# ----------------------------------------------------------------------------
def dn4pp_query_only_kernel(x_ref, w_ref, v_ref, out_ref, *, in_dim):
    q = _descriptors(x_ref[...], w_ref, v_ref, in_dim)
    out_ref[...] = _predict_row(q, w_ref, v_ref)


def dn4pp_fused_kernel(z_ref, w_ref, v_ref, out_ref, *, in_dim, n_query, s_valid):
    """Single-tile case: ONE descriptor pass over [query rows ; support rows]."""
    d_all = _descriptors(z_ref[...], w_ref, v_ref, in_dim)
    q = d_all[:n_query, :]
    sup = d_all[n_query:, :]
    wf = _attend_support(q, sup.astype(jnp.bfloat16),
                         _normalize_rows(sup).astype(jnp.bfloat16), s_valid)
    out_ref[...] = _predict_row(wf, w_ref, v_ref)


def dn4pp_support_prep_kernel(s_ref, w_ref, v_ref, sup_ref, shat_ref, *, in_dim):
    """Runs once: weighted + normalized support descriptors for the multi-tile path."""
    sup = _descriptors(s_ref[...], w_ref, v_ref, in_dim)
    sup_ref[...] = sup.astype(jnp.bfloat16)
    shat_ref[...] = _normalize_rows(sup).astype(jnp.bfloat16)


def dn4pp_main_kernel(x_ref, sup_ref, shat_ref, w_ref, v_ref, out_ref, *, in_dim, s_valid):
    """Multi-tile case: support descriptors are precomputed (hoisted)."""
    q = _descriptors(x_ref[...], w_ref, v_ref, in_dim)
    wf = _attend_support(q, sup_ref[...], shat_ref[...], s_valid)
    out_ref[...] = _predict_row(wf, w_ref, v_ref)


# ----------------------------------------------------------------------------
# Parameter init (raw, PyTorch-like) and fold/pack for the kernel
# ----------------------------------------------------------------------------
def init_params(key, input_dim, hidden_dim=32):
    """Raw eval-mode parameters mirroring the PyTorch module (BN = running stats)."""
    H, H2, H4 = hidden_dim, hidden_dim // 2, hidden_dim // 4
    keys = jax.random.split(key, 11)

    def lin(k, din, dout):
        bound = 1.0 / float(din) ** 0.5
        kw, kb = jax.random.split(k)
        w = jax.random.uniform(kw, (din, dout), jnp.float32, -bound, bound)
        b = jax.random.uniform(kb, (dout,), jnp.float32, -bound, bound)
        return w, b

    def bn(k, n):
        k1, k2, k3, k4 = jax.random.split(k, 4)
        gamma = jax.random.uniform(k1, (n,), jnp.float32, 0.5, 1.5)
        beta = 0.1 * jax.random.normal(k2, (n,), jnp.float32)
        mean = 0.1 * jax.random.normal(k3, (n,), jnp.float32)
        var = jax.random.uniform(k4, (n,), jnp.float32, 0.5, 1.5)
        return (gamma, beta, mean, var)

    w1, b1 = lin(keys[0], input_dim, H)
    w2, b2 = lin(keys[1], H, H)
    w3, b3 = lin(keys[2], H, H2)
    wa1, ba1 = lin(keys[3], H2, H4)
    wa2, ba2 = lin(keys[4], H4, 1)
    wp1, bp1 = lin(keys[5], H2, H4)
    wp2, bp2 = lin(keys[6], H4, 1)
    return dict(w1=w1, b1=b1, bn1=bn(keys[7], H),
                w2=w2, b2=b2, bn2=bn(keys[8], H),
                w3=w3, b3=b3, bn3=bn(keys[9], H2),
                wa1=wa1, ba1=ba1, wa2=wa2, ba2=ba2,
                wp1=wp1, bp1=bp1, bnp=bn(keys[10], H4),
                wp2=wp2, bp2=bp2)


def pack_params(raw):
    """Fold BN affines into adjacent Linears, pad feature dims to 128 lanes, and
    pack into W_all (640,128) bf16 (MXU operands) + V_all (16,128) f32 (VPU ops)."""
    def bn_affine(bn_tuple):
        gamma, beta, mean, var = bn_tuple
        scale = gamma / jnp.sqrt(var + 1e-5)
        shift = beta - mean * scale
        return scale, shift

    g1, s1 = bn_affine(raw["bn1"])
    g2, s2 = bn_affine(raw["bn2"])
    g3, s3 = bn_affine(raw["bn3"])
    gp, sp = bn_affine(raw["bnp"])

    # (relu(x) * g + s) @ W + b  ==  relu(x) @ (g[:,None]*W) + (s @ W + b)
    w2f = raw["w2"] * g1[:, None]
    b2f = s1 @ raw["w2"] + raw["b2"]
    w3f = raw["w3"] * g2[:, None]
    b3f = s2 @ raw["w3"] + raw["b3"]
    wp2f = (raw["wp2"] * gp[:, None])[:, 0]          # (H4,)
    bp2f = (sp @ raw["wp2"] + raw["bp2"])[0]         # scalar

    def pad_mat(w):
        assert w.shape[0] <= P and w.shape[1] <= P
        return jnp.zeros((P, P), jnp.float32).at[: w.shape[0], : w.shape[1]].set(w)

    def pad_row(v):
        assert v.shape[0] <= P
        return jnp.zeros((P,), jnp.float32).at[: v.shape[0]].set(v)

    W_all = jnp.concatenate(
        [pad_mat(raw["w1"]), pad_mat(w2f), pad_mat(w3f),
         pad_mat(raw["wa1"]), pad_mat(raw["wp1"])], axis=0
    ).astype(jnp.bfloat16)                                           # (640, 128) bf16

    scalars = jnp.zeros((P,), jnp.float32).at[0].set(raw["ba2"][0]).at[1].set(bp2f)
    rows = [pad_row(raw["b1"]), pad_row(b2f), pad_row(b3f), pad_row(g3), pad_row(s3),
            pad_row(raw["ba1"]), pad_row(raw["wa2"][:, 0]), pad_row(raw["bp1"]),
            pad_row(wp2f), scalars] + [jnp.zeros((P,), jnp.float32)] * 6
    V_all = jnp.stack(rows, axis=0)                                  # (16, 128) f32
    return W_all, V_all


# ----------------------------------------------------------------------------
# Pallas-backed forward
# ----------------------------------------------------------------------------
def dn4plusplus_forward(W_all, V_all, x, support_set=None, *, tile_b_max=TILE_B_MAX):
    B, D = x.shape
    assert D <= P, "input_dim must be <= 128 for this packing"
    d8 = _round_up(D, 8)                      # pad feature dim to sublane multiple only

    bp8 = _round_up(max(B, 8), 8)
    if bp8 <= tile_b_max:
        tile_b, b_pad = bp8, bp8
    else:
        tile_b = max(128, (tile_b_max // 128) * 128)   # lane-dense output tiles
        b_pad = _round_up(B, tile_b)
    grid = (b_pad // tile_b,)

    x = x.astype(jnp.float32)
    if (b_pad, d8) == (B, D):
        xp = x                                 # no wrapper pad op in the common case
    else:
        xp = jnp.zeros((b_pad, d8), jnp.float32).at[:B, :D].set(x)

    x_spec = pl.BlockSpec((tile_b, d8), lambda i: (i, 0))
    w_spec = pl.BlockSpec((5 * P, P), lambda i: (0, 0))
    v_spec = pl.BlockSpec((16, P), lambda i: (0, 0))
    out_spec = pl.BlockSpec((1, tile_b), lambda i: (0, i))
    out_shape = jax.ShapeDtypeStruct((1, b_pad), jnp.float32)
    cparams = pltpu.CompilerParams(dimension_semantics=("parallel",))

    def _cost(rows, s_cols):
        flops = 2 * rows * (6 * P * P + 2 * P * max(s_cols, 1))
        transcendentals = rows * (s_cols + 4)
        bytes_accessed = (rows * (d8 + 1) * 4 + 5 * P * P * 2 + 16 * P * 4
                          + 2 * s_cols * P * 2)
        return pl.CostEstimate(flops=int(flops), transcendentals=int(transcendentals),
                               bytes_accessed=int(bytes_accessed))

    if support_set is None:
        kernel = functools.partial(dn4pp_query_only_kernel, in_dim=d8)
        out = pl.pallas_call(
            kernel, out_shape=out_shape,
            grid_spec=pltpu.PrefetchScalarGridSpec(
                num_scalar_prefetch=0, grid=grid,
                in_specs=[x_spec, w_spec, v_spec], out_specs=out_spec),
            compiler_params=cparams,
            cost_estimate=_cost(b_pad, 0),
        )(xp, W_all, V_all)
        return out[0, :B].reshape(B, 1)

    S, Ds = support_set.shape
    assert Ds == D, "query and support feature dims must match"
    support_set = support_set.astype(jnp.float32)
    s_pad = _round_up(max(S, 1), P)            # lane-dense sim / softmax tiles

    if grid[0] == 1:
        # Single query tile: one descriptor pass over [query ; support] rows.
        n_all = b_pad + s_pad
        z_all = (jnp.zeros((n_all, d8), jnp.float32)
                 .at[:B, :D].set(x)
                 .at[b_pad:b_pad + S, :D].set(support_set))
        z_spec = pl.BlockSpec((n_all, d8), lambda i: (0, 0))
        kernel = functools.partial(dn4pp_fused_kernel, in_dim=d8,
                                   n_query=b_pad, s_valid=S)
        out = pl.pallas_call(
            kernel, out_shape=out_shape,
            grid_spec=pltpu.PrefetchScalarGridSpec(
                num_scalar_prefetch=0, grid=grid,
                in_specs=[z_spec, w_spec, v_spec], out_specs=out_spec),
            compiler_params=cparams,
            cost_estimate=_cost(n_all, s_pad),
        )(z_all, W_all, V_all)
        return out[0, :B].reshape(B, 1)

    # Multi-tile: hoist the support descriptor chain into its own pallas_call so
    # it runs once (not per query tile).  Safe with "parallel" semantics on v7x.
    if (s_pad, d8) == (S, D):
        sp_arr = support_set
    else:
        sp_arr = jnp.zeros((s_pad, d8), jnp.float32).at[:S, :D].set(support_set)
    s_in_spec = pl.BlockSpec((s_pad, d8), lambda i: (0, 0))
    s_out_spec = pl.BlockSpec((s_pad, P), lambda i: (0, 0))

    prep = functools.partial(dn4pp_support_prep_kernel, in_dim=d8)
    sup_b, shat_b = pl.pallas_call(
        prep,
        out_shape=(jax.ShapeDtypeStruct((s_pad, P), jnp.bfloat16),
                   jax.ShapeDtypeStruct((s_pad, P), jnp.bfloat16)),
        grid_spec=pltpu.PrefetchScalarGridSpec(
            num_scalar_prefetch=0, grid=(1,),
            in_specs=[s_in_spec, w_spec, v_spec],
            out_specs=[s_out_spec, s_out_spec]),
        compiler_params=pltpu.CompilerParams(dimension_semantics=("arbitrary",)),
        cost_estimate=_cost(s_pad, 0),
    )(sp_arr, W_all, V_all)

    sup_spec = pl.BlockSpec((s_pad, P), lambda i: (0, 0))
    kernel = functools.partial(dn4pp_main_kernel, in_dim=d8, s_valid=S)
    out = pl.pallas_call(
        kernel, out_shape=out_shape,
        grid_spec=pltpu.PrefetchScalarGridSpec(
            num_scalar_prefetch=0, grid=grid,
            in_specs=[x_spec, sup_spec, sup_spec, w_spec, v_spec],
            out_specs=out_spec),
        compiler_params=cparams,
        cost_estimate=_cost(b_pad, s_pad),
    )(xp, sup_b, shat_b, W_all, V_all)
    return out[0, :B].reshape(B, 1)


# ----------------------------------------------------------------------------
# Pure-JAX references
# ----------------------------------------------------------------------------
def packed_reference_forward(W_all, V_all, x, support_set=None):
    """Mirror of the kernel math (same folded/packed bf16 params) in plain JAX."""
    B, D = x.shape
    d8 = _round_up(D, 8)
    xp = jnp.zeros((B, d8), jnp.float32).at[:, :D].set(x.astype(jnp.float32))
    q = _descriptors(xp, W_all, V_all, d8)
    if support_set is None:
        return _predict_row(q, W_all, V_all)[0].reshape(B, 1)
    S, _ = support_set.shape
    sp = jnp.zeros((S, d8), jnp.float32).at[:, :D].set(support_set.astype(jnp.float32))
    sup = _descriptors(sp, W_all, V_all, d8)
    wf = _attend_support(q, sup.astype(jnp.bfloat16),
                         _normalize_rows(sup).astype(jnp.bfloat16), S)
    return _predict_row(wf, W_all, V_all)[0].reshape(B, 1)


def reference_forward(raw, x, support_set=None):
    """Unfolded f32 reference mirroring the PyTorch module in eval mode."""
    def bn(h, bn_tuple):
        gamma, beta, mean, var = bn_tuple
        return (h - mean) / jnp.sqrt(var + 1e-5) * gamma + beta

    def feats(z):
        h = jnp.maximum(z @ raw["w1"] + raw["b1"], 0.0); h = bn(h, raw["bn1"])
        h = jnp.maximum(h @ raw["w2"] + raw["b2"], 0.0); h = bn(h, raw["bn2"])
        d = jnp.maximum(h @ raw["w3"] + raw["b3"], 0.0); d = bn(d, raw["bn3"])
        a = jnp.maximum(d @ raw["wa1"] + raw["ba1"], 0.0)
        a = jax.nn.sigmoid(a @ raw["wa2"] + raw["ba2"])
        return d * a

    def predict(w):
        q = jnp.maximum(w @ raw["wp1"] + raw["bp1"], 0.0); q = bn(q, raw["bnp"])
        return q @ raw["wp2"] + raw["bp2"]

    q = feats(x)
    if support_set is None:
        return predict(q)
    s = feats(support_set)
    qn = jnp.maximum(jnp.linalg.norm(q, axis=-1, keepdims=True), 1e-8)
    sn = jnp.maximum(jnp.linalg.norm(s, axis=-1, keepdims=True), 1e-8)
    sim = (q / qn) @ (s / sn).T
    sw = jax.nn.softmax(sim * 10.0, axis=1)
    wf = sw @ s
    return predict(wf)


if __name__ == "__main__":
    key = jax.random.PRNGKey(0)
    kx, ks, kp, kb = jax.random.split(key, 4)

    input_dim, hidden_dim = 32, 32   # H2 = 16, H4 = 8
    batch, support_size = 8, 8

    x = jax.random.normal(kx, (batch, input_dim), jnp.float32)
    support = jax.random.normal(ks, (support_size, input_dim), jnp.float32)

    raw = init_params(kp, input_dim, hidden_dim)
    W_all, V_all = pack_params(raw)

    # Fused single-tile path (support) and query-only path.
    out_sup = dn4plusplus_forward(W_all, V_all, x, support)
    out_q = dn4plusplus_forward(W_all, V_all, x, None)

    # Multi-tile path (separate hoisted support-prep pallas_call), small shapes.
    x_big = jax.random.normal(kb, (256, input_dim), jnp.float32)
    out_big = dn4plusplus_forward(W_all, V_all, x_big, support, tile_b_max=128)

    jax.block_until_ready((out_sup, out_q, out_big))

    assert out_sup.shape == (batch, 1) and out_q.shape == (batch, 1)
    assert out_big.shape == (256, 1)
    assert jnp.all(jnp.isfinite(out_sup)) and jnp.all(jnp.isfinite(out_q))
    assert jnp.all(jnp.isfinite(out_big))

    # Tight check: kernel vs pure-JAX math on the identical folded/packed bf16 params.
    m_sup = packed_reference_forward(W_all, V_all, x, support)
    m_q = packed_reference_forward(W_all, V_all, x, None)
    m_big = packed_reference_forward(W_all, V_all, x_big, support)
    assert jnp.allclose(out_sup, m_sup, rtol=5e-3, atol=5e-3)
    assert jnp.allclose(out_q, m_q, rtol=5e-3, atol=5e-3)
    assert jnp.allclose(out_big, m_big, rtol=5e-3, atol=5e-3)

    # Sanity check vs the unfolded f32 reference.  Tolerance covers bf16 MXU
    # operand rounding, amplified through the temperature-10 softmax; the tight
    # packed-reference check above is the real correctness gate.
    ref_sup = reference_forward(raw, x, support)
    ref_q = reference_forward(raw, x, None)
    ref_big = reference_forward(raw, x_big, support)
    assert jnp.allclose(out_sup, ref_sup, rtol=5e-2, atol=7e-2)
    assert jnp.allclose(out_q, ref_q, rtol=5e-2, atol=7e-2)
    assert jnp.allclose(out_big, ref_big, rtol=5e-2, atol=7e-2)

    print("KERNEL_OK")
</pallas_src>

<mosaic_0001>
module attributes {stable_mosaic.version = 11 : i64} {
  func.func @dn4pp_fused_kernel(%arg0: i32, %arg1: memref<136x32xf32, #tpu.memory_space<vmem>>, %arg2: memref<640x128xbf16, #tpu.memory_space<vmem>>, %arg3: memref<16x128xf32, #tpu.memory_space<vmem>>, %arg4: memref<1x8xf32, #tpu.memory_space<vmem>>) attributes {dimension_semantics = [#tpu.dimension_semantics<parallel>], iteration_bounds = array<i64: 1>, scalar_prefetch = 0 : i64, scratch_operands = 0 : i64, tpu.core_type = #tpu.core_type<tc>, window_params = [{pipeline_mode = #tpu.pipeline_mode<synchronous>, transform_indices = @transform_0, window_bounds = array<i64: 136, 32>}, {pipeline_mode = #tpu.pipeline_mode<synchronous>, transform_indices = @transform_1, window_bounds = array<i64: 640, 128>}, {pipeline_mode = #tpu.pipeline_mode<synchronous>, transform_indices = @transform_2, window_bounds = array<i64: 16, 128>}, {transform_indices = @transform_3, window_bounds = array<i64: 1, 8>}]} {
    %c0 = arith.constant 0 : index
    %c0_0 = arith.constant 0 : index
    %0 = vector.load %arg1[%c0, %c0_0] : memref<136x32xf32, #tpu.memory_space<vmem>>, vector<136x32xf32>
    %c0_1 = arith.constant 0 : index
    %c0_2 = arith.constant 0 : index
    %1 = vector.load %arg2[%c0_1, %c0_2] : memref<640x128xbf16, #tpu.memory_space<vmem>>, vector<32x128xbf16>
    %c128 = arith.constant 128 : index
    %c0_3 = arith.constant 0 : index
    %2 = vector.load %arg2[%c128, %c0_3] : memref<640x128xbf16, #tpu.memory_space<vmem>>, vector<128x128xbf16>
    %c256 = arith.constant 256 : index
    %c0_4 = arith.constant 0 : index
    %3 = vector.load %arg2[%c256, %c0_4] : memref<640x128xbf16, #tpu.memory_space<vmem>>, vector<128x128xbf16>
    %c384 = arith.constant 384 : index
    %c0_5 = arith.constant 0 : index
    %4 = vector.load %arg2[%c384, %c0_5] : memref<640x128xbf16, #tpu.memory_space<vmem>>, vector<128x128xbf16>
    %c0_6 = arith.constant 0 : index
    %c0_7 = arith.constant 0 : index
    %5 = vector.load %arg3[%c0_6, %c0_7] : memref<16x128xf32, #tpu.memory_space<vmem>>, vector<1x128xf32>
    %c1 = arith.constant 1 : index
    %c0_8 = arith.constant 0 : index
    %6 = vector.load %arg3[%c1, %c0_8] : memref<16x128xf32, #tpu.memory_space<vmem>>, vector<1x128xf32>
    %c2 = arith.constant 2 : index
    %c0_9 = arith.constant 0 : index
    %7 = vector.load %arg3[%c2, %c0_9] : memref<16x128xf32, #tpu.memory_space<vmem>>, vector<1x128xf32>
    %c3 = arith.constant 3 : index
    %c0_10 = arith.constant 0 : index
    %8 = vector.load %arg3[%c3, %c0_10] : memref<16x128xf32, #tpu.memory_space<vmem>>, vector<1x128xf32>
    %c4 = arith.constant 4 : index
    %c0_11 = arith.constant 0 : index
    %9 = vector.load %arg3[%c4, %c0_11] : memref<16x128xf32, #tpu.memory_space<vmem>>, vector<1x128xf32>
    %c5 = arith.constant 5 : index
    %c0_12 = arith.constant 0 : index
    %10 = vector.load %arg3[%c5, %c0_12] : memref<16x128xf32, #tpu.memory_space<vmem>>, vector<1x128xf32>
    %c6 = arith.constant 6 : index
    %c0_13 = arith.constant 0 : index
    %11 = vector.load %arg3[%c6, %c0_13] : memref<16x128xf32, #tpu.memory_space<vmem>>, vector<1x128xf32>
    %c9 = arith.constant 9 : index
    %c0_14 = arith.constant 0 : index
    %12 = vector.load %arg3[%c9, %c0_14] : memref<16x128xf32, #tpu.memory_space<vmem>>, vector<1x1xf32>
    %13 = arith.truncf %0 : vector<136x32xf32> to vector<136x32xbf16>
    %cst = arith.constant dense<0.000000e+00> : vector<136x128xf32>
    %14 = tpu.matmul %13, %1, %cst {dimension_numbers = #tpu.dot_dimension_numbers<[1], [0], [0], [1], [0, 0, 1, 1], [], []>} : vector<136x32xbf16>, vector<32x128xbf16>, vector<136x128xf32> -> vector<136x128xf32>
    %15 = vector.broadcast %5 : vector<1x128xf32> to vector<136x128xf32>
    %16 = arith.addf %14, %15 : vector<136x128xf32>
    %cst_15 = arith.constant 0.000000e+00 : f32
    %17 = vector.broadcast %cst_15 : f32 to vector<136x128xf32>
    %18 = arith.maximumf %16, %17 : vector<136x128xf32>
    %19 = arith.truncf %18 : vector<136x128xf32> to vector<136x128xbf16>
    %cst_16 = arith.constant dense<0.000000e+00> : vector<136x128xf32>
    %20 = tpu.matmul %19, %2, %cst_16 {dimension_numbers = #tpu.dot_dimension_numbers<[1], [0], [0], [1], [0, 0, 1, 1], [], []>} : vector<136x128xbf16>, vector<128x128xbf16>, vector<136x128xf32> -> vector<136x128xf32>
    %21 = vector.broadcast %6 : vector<1x128xf32> to vector<136x128xf32>
    %22 = arith.addf %20, %21 : vector<136x128xf32>
    %cst_17 = arith.constant 0.000000e+00 : f32
    %23 = vector.broadcast %cst_17 : f32 to vector<136x128xf32>
    %24 = arith.maximumf %22, %23 : vector<136x128xf32>
    %25 = arith.truncf %24 : vector<136x128xf32> to vector<136x128xbf16>
    %cst_18 = arith.constant dense<0.000000e+00> : vector<136x128xf32>
    %26 = tpu.matmul %25, %3, %cst_18 {dimension_numbers = #tpu.dot_dimension_numbers<[1], [0], [0], [1], [0, 0, 1, 1], [], []>} : vector<136x128xbf16>, vector<128x128xbf16>, vector<136x128xf32> -> vector<136x128xf32>
    %27 = vector.broadcast %7 : vector<1x128xf32> to vector<136x128xf32>
    %28 = arith.addf %26, %27 : vector<136x128xf32>
    %cst_19 = arith.constant 0.000000e+00 : f32
    %29 = vector.broadcast %cst_19 : f32 to vector<136x128xf32>
    %30 = arith.maximumf %28, %29 : vector<136x128xf32>
    %31 = vector.broadcast %8 : vector<1x128xf32> to vector<136x128xf32>
    %32 = arith.mulf %30, %31 : vector<136x128xf32>
    %33 = vector.broadcast %9 : vector<1x128xf32> to vector<136x128xf32>
    %34 = arith.addf %32, %33 : vector<136x128xf32>
    %35 = arith.truncf %34 : vector<136x128xf32> to vector<136x128xbf16>
    %cst_20 = arith.constant dense<0.000000e+00> : vector<136x128xf32>
    %36 = tpu.matmul %35, %4, %cst_20 {dimension_numbers = #tpu.dot_dimension_numbers<[1], [0], [0], [1], [0, 0, 1, 1], [], []>} : vector<136x128xbf16>, vector<128x128xbf16>, vector<136x128xf32> -> vector<136x128xf32>
    %37 = vector.broadcast %10 : vector<1x128xf32> to vector<136x128xf32>
    %38 = arith.addf %36, %37 : vector<136x128xf32>
    %cst_21 = arith.constant 0.000000e+00 : f32
    %39 = vector.broadcast %cst_21 : f32 to vector<136x128xf32>
    %40 = arith.maximumf %38, %39 : vector<136x128xf32>
    %41 = vector.broadcast %11 : vector<1x128xf32> to vector<136x128xf32>
    %42 = arith.mulf %40, %41 : vector<136x128xf32>
    %cst_22 = arith.constant dense<0.000000e+00> : vector<136xf32>
    %43 = vector.multi_reduction <add>, %42, %cst_22 [1] : vector<136x128xf32> to vector<136xf32>
    %44 = vector.shape_cast %43 : vector<136xf32> to vector<136x1xf32>
    %45 = vector.broadcast %12 : vector<1x1xf32> to vector<136x1xf32>
    %46 = arith.addf %44, %45 : vector<136x1xf32>
    %47 = arith.negf %46 : vector<136x1xf32>
    %48 = math.exp %47 : vector<136x1xf32>
    %cst_23 = arith.constant 1.000000e+00 : f32
    %49 = vector.broadcast %cst_23 : f32 to vector<136x1xf32>
    %50 = arith.addf %49, %48 : vector<136x1xf32>
    %51 = arith.divf %49, %50 : vector<136x1xf32>
    %52 = vector.broadcast %51 : vector<136x1xf32> to vector<136x128xf32>
    %53 = arith.mulf %34, %52 : vector<136x128xf32>
    %54 = vector.extract_strided_slice %53 {offsets = [0, 0], sizes = [8, 128], strides = [1, 1]} : vector<136x128xf32> to vector<8x128xf32>
    %55 = vector.extract_strided_slice %53 {offsets = [8, 0], sizes = [128, 128], strides = [1, 1]} : vector<136x128xf32> to vector<128x128xf32>
    %56 = arith.truncf %55 : vector<128x128xf32> to vector<128x128xbf16>
    %57 = arith.mulf %55, %55 : vector<128x128xf32>
    %cst_24 = arith.constant dense<0.000000e+00> : vector<128xf32>
    %58 = vector.multi_reduction <add>, %57, %cst_24 [1] : vector<128x128xf32> to vector<128xf32>
    %59 = vector.shape_cast %58 : vector<128xf32> to vector<128x1xf32>
    %cst_25 = arith.constant 1.000000e-16 : f32
    %60 = vector.broadcast %cst_25 : f32 to vector<128x1xf32>
    %61 = arith.maximumf %59, %60 : vector<128x1xf32>
    %62 = math.rsqrt %61 : vector<128x1xf32>
    %63 = vector.broadcast %62 : vector<128x1xf32> to vector<128x128xf32>
    %64 = arith.mulf %55, %63 : vector<128x128xf32>
    %65 = arith.truncf %64 : vector<128x128xf32> to vector<128x128xbf16>
    %66 = arith.mulf %54, %54 : vector<8x128xf32>
    %cst_26 = arith.constant dense<0.000000e+00> : vector<8xf32>
    %67 = vector.multi_reduction <add>, %66, %cst_26 [1] : vector<8x128xf32> to vector<8xf32>
    %68 = vector.shape_cast %67 : vector<8xf32> to vector<8x1xf32>
    %cst_27 = arith.constant 1.000000e-16 : f32
    %69 = vector.broadcast %cst_27 : f32 to vector<8x1xf32>
    %70 = arith.maximumf %68, %69 : vector<8x1xf32>
    %71 = math.rsqrt %70 : vector<8x1xf32>
    %72 = vector.broadcast %71 : vector<8x1xf32> to vector<8x128xf32>
    %73 = arith.mulf %54, %72 : vector<8x128xf32>
    %74 = arith.truncf %73 : vector<8x128xf32> to vector<8x128xbf16>
    %cst_28 = arith.constant dense<0.000000e+00> : vector<8x128xf32>
    %75 = tpu.matmul %74, %65, %cst_28 {dimension_numbers = #tpu.dot_dimension_numbers<[1], [1], [0], [0], [0, 0, 1, 0], [], []>} : vector<8x128xbf16>, vector<128x128xbf16>, vector<8x128xf32> -> vector<8x128xf32>
    %cst_29 = arith.constant 1.000000e+01 : f32
    %76 = vector.broadcast %cst_29 : f32 to vector<8x128xf32>
    %77 = arith.mulf %75, %76 : vector<8x128xf32>
    %78 = tpu.iota {dimensions = array<i32: 1>} : vector<8x128xi32>
    %c8_i32 = arith.constant 8 : i32
    %79 = vector.broadcast %c8_i32 : i32 to vector<8x128xi32>
    %80 = arith.cmpi slt, %78, %79 : vector<8x128xi32>
    %cst_30 = arith.constant -1.000000e+30 : f32
    %81 = vector.broadcast %cst_30 : f32 to vector<8x128xf32>
    %82 = arith.select %80, %77, %81 : vector<8x128xi1>, vector<8x128xf32>
    %cst_31 = arith.constant dense<0xFF800000> : vector<8xf32>
    %83 = vector.multi_reduction <maximumf>, %82, %cst_31 [1] : vector<8x128xf32> to vector<8xf32>
    %84 = vector.shape_cast %83 : vector<8xf32> to vector<8x1xf32>
    %85 = vector.broadcast %84 : vector<8x1xf32> to vector<8x128xf32>
    %86 = arith.subf %82, %85 : vector<8x128xf32>
    %87 = math.exp %86 : vector<8x128xf32>
    %cst_32 = arith.constant dense<0.000000e+00> : vector<8xf32>
    %88 = vector.multi_reduction <add>, %87, %cst_32 [1] : vector<8x128xf32> to vector<8xf32>
    %89 = vector.shape_cast %88 : vector<8xf32> to vector<8x1xf32>
    %90 = vector.broadcast %89 : vector<8x1xf32> to vector<8x128xf32>
    %91 = arith.divf %87, %90 : vector<8x128xf32>
    %92 = arith.truncf %91 : vector<8x128xf32> to vector<8x128xbf16>
    %cst_33 = arith.constant dense<0.000000e+00> : vector<8x128xf32>
    %93 = tpu.matmul %92, %56, %cst_33 {dimension_numbers = #tpu.dot_dimension_numbers<[1], [0], [0], [1], [0, 0, 1, 1], [], []>} : vector<8x128xbf16>, vector<128x128xbf16>, vector<8x128xf32> -> vector<8x128xf32>
    %c512 = arith.constant 512 : index
    %c0_34 = arith.constant 0 : index
    %94 = vector.load %arg2[%c512, %c0_34] : memref<640x128xbf16, #tpu.memory_space<vmem>>, vector<128x128xbf16>
    %c7 = arith.constant 7 : index
    %c0_35 = arith.constant 0 : index
    %95 = vector.load %arg3[%c7, %c0_35] : memref<16x128xf32, #tpu.memory_space<vmem>>, vector<1x128xf32>
    %c8 = arith.constant 8 : index
    %c0_36 = arith.constant 0 : index
    %96 = vector.load %arg3[%c8, %c0_36] : memref<16x128xf32, #tpu.memory_space<vmem>>, vector<1x128xf32>
    %c9_37 = arith.constant 9 : index
    %c1_38 = arith.constant 1 : index
    %97 = vector.load %arg3[%c9_37, %c1_38] : memref<16x128xf32, #tpu.memory_space<vmem>>, vector<1x1xf32>
    %98 = arith.truncf %93 : vector<8x128xf32> to vector<8x128xbf16>
    %cst_39 = arith.constant dense<0.000000e+00> : vector<8x128xf32>
    %99 = tpu.matmul %98, %94, %cst_39 {dimension_numbers = #tpu.dot_dimension_numbers<[1], [0], [0], [1], [0, 0, 1, 1], [], []>} : vector<8x128xbf16>, vector<128x128xbf16>, vector<8x128xf32> -> vector<8x128xf32>
    %100 = vector.broadcast %95 : vector<1x128xf32> to vector<8x128xf32>
    %101 = arith.addf %99, %100 : vector<8x128xf32>
    %cst_40 = arith.constant 0.000000e+00 : f32
    %102 = vector.broadcast %cst_40 : f32 to vector<8x128xf32>
    %103 = arith.maximumf %101, %102 : vector<8x128xf32>
    %104 = arith.truncf %96 : vector<1x128xf32> to vector<1x128xbf16>
    %105 = arith.truncf %103 : vector<8x128xf32> to vector<8x128xbf16>
    %cst_41 = arith.constant dense<0.000000e+00> : vector<1x8xf32>
    %106 = tpu.matmul %104, %105, %cst_41 {dimension_numbers = #tpu.dot_dimension_numbers<[1], [1], [0], [0], [0, 0, 1, 0], [], []>} : vector<1x128xbf16>, vector<8x128xbf16>, vector<1x8xf32> -> vector<1x8xf32>
    %107 = vector.broadcast %97 : vector<1x1xf32> to vector<1x8xf32>
    %108 = arith.addf %106, %107 : vector<1x8xf32>
    %c0_42 = arith.constant 0 : index
    %c0_43 = arith.constant 0 : index
    %109 = vector.load %arg4[%c0_42, %c0_43] : memref<1x8xf32, #tpu.memory_space<vmem>>, vector<1x8xf32>
    tpu.vector_store %arg4[%c0_42, %c0_43], %108 {strides = array<i32>} : memref<1x8xf32, #tpu.memory_space<vmem>>, vector<1x8xf32>,
    return
  }
  func.func @transform_0(%arg0: i32) -> (i32, i32) {
    %c0_i32 = arith.constant 0 : i32
    %c0_i32_0 = arith.constant 0 : i32
    %c0_i32_1 = arith.constant 0 : i32
    return %c0_i32, %c0_i32_0 : i32, i32
  }
  func.func @transform_1(%arg0: i32) -> (i32, i32) {
    %c0_i32 = arith.constant 0 : i32
    %c0_i32_0 = arith.constant 0 : i32
    %c0_i32_1 = arith.constant 0 : i32
    return %c0_i32, %c0_i32_0 : i32, i32
  }
  func.func @transform_2(%arg0: i32) -> (i32, i32) {
    %c0_i32 = arith.constant 0 : i32
    %c0_i32_0 = arith.constant 0 : i32
    %c0_i32_1 = arith.constant 0 : i32
    return %c0_i32, %c0_i32_0 : i32, i32
  }
  func.func @transform_3(%arg0: i32) -> (i32, i32) {
    %c0_i32 = arith.constant 0 : i32
    %c0_i32_0 = arith.constant 0 : i32
    return %c0_i32, %arg0 : i32, i32
  }
}

</mosaic_0001>

<bundles_post_ra>
// kernel: tpu_custom_call.1
= control target key start
LH: loop header
LB: loop body
LE: loop exit
PB: predicated region body
PF: predicated region fallthrough
CT: control target
= control target key end

     0   :  { %8 = vsyncpa [#allocation3], 0  ;;  %s2539_s0 = inlined_call_operand.vmem [shape: f32[136,32], index: 0, kind: input, shape index: {}]   ;;  %s2540_s1 = inlined_call_operand.hbm [shape: bf16[640,128], index: 1, kind: input, shape index: {}]   ;;  %s2541_s2 = inlined_call_operand.vmem [shape: f32[16,128], index: 2, kind: input, shape index: {}]   ;;  %s2542_s3 = inlined_call_operand.hbm [shape: f32[1,8], index: 3, kind: output, shape index: {}]  }
   0x1   :  { %9 = vsyncpa [#allocation4], 0  ;;  %s16_s14 = sshll.u32 %s2540_s1, 4  ;;  %s1965_s15 = smov [#allocation2]   ;;  %s17_s14 = int_to_ptr.hbm [resolvable:$true] %s16_s14 }
   0x2   :  { %s18_s16 = sshll.u32 %s1965_s15, 4  ;;  %s1966_s17 = smov 64   ;;  %s19_s16 = int_to_ptr.vmem [resolvable:$true] %s18_s16 }
   0x3   :  { %s1967_s18 = smov 4  }
   0x4   :  { %24 = dma.hbm_to_vmem [thread:$0]  %s17_s14, 5120, %s19_s16, [#allocation3], %s1966_s17, %s1966_s17, %s1967_s18  }
   0x5   :  { %1961 = dma.done.wait [#allocation3], 5120  }
   0x6   :  { %1962 = vsyncadd [#allocation3], 4294962176  ;;  %v1754_v0 = vld [vmem:[#allocation2 + $0x8] sm:$0xff]  ;;  %v1753_v1 = vld [vmem:[#allocation2] sm:$0xff]  ;;  %vm131_vm0 = vcmask 261120   ;;  %s1970_s18 = smov [#allocation5]  }
   0x7   :  { %165 = vmatpush.bf16.msra.mxu0 %v1754_v0  ;;  %v32_v2 = vld [vmem:[%s2539_s0] sm:$0xff]  ;;  %v33_v3 = vld [vmem:[%s2539_s0 + $0x8] sm:$0xff]  ;;  %v34_v5 = vld [vmem:[%s2539_s0 + $0x10] sm:$0xff]  ;;  %s1579_s19 = sshll.u32 %s1970_s18, 4  ;;  %s1581_s22 = sshll.u32 %s2542_s3, 4  ;;  %s1580_s19 = int_to_ptr.vmem [resolvable:$true] %s1579_s19  ;;  %s1582_s22 = int_to_ptr.hbm [resolvable:$true] %s1581_s22 }
   0x8   :  { %v109_v4 = vpack.c.bf16 %v33_v3, %v32_v2  ;;  %v35_v6 = vld [vmem:[%s2539_s0 + $0x18] sm:$0xff]  ;;  %v36_v8 = vld [vmem:[%s2539_s0 + $0x20] sm:$0xff]  ;;  %v37_v9 = vld [vmem:[%s2539_s0 + $0x28] sm:$0xff] }
   0x9   :  { %v110_v7 = vpack.c.bf16 %v35_v6, %v34_v5  ;;  %v111_v10 = vpack.c.bf16 %v37_v9, %v36_v8  ;;  %v38_v11 = vld [vmem:[%s2539_s0 + $0x30] sm:$0xff]  ;;  %v39_v12 = vld [vmem:[%s2539_s0 + $0x38] sm:$0xff]  ;;  %v40_v14 = vld [vmem:[%s2539_s0 + $0x40] sm:$0xff] }
   0xa   :  { %v112_v13 = vpack.c.bf16 %v39_v12, %v38_v11  ;;  %v41_v15 = vld [vmem:[%s2539_s0 + $0x48] sm:$0xff]  ;;  %v1762_v17 = vld [vmem:[#allocation2 + $0x78] sm:$0xff]  ;;  %v42_v18 = vld [vmem:[%s2539_s0 + $0x50] sm:$0xff] }
   0xb   :  { %166 = vmatpush.bf16.msra.mxu0 %v1753_v1  ;;  %v113_v16 = vpack.c.bf16 %v41_v15, %v40_v14  ;;  %287 = vmatpush.bf16.msra.mxu1 %v1762_v17  ;;  %v43_v19 = vld [vmem:[%s2539_s0 + $0x58] sm:$0xff]  ;;  %v1761_v21 = vld [vmem:[#allocation2 + $0x70] sm:$0xff]  ;;  %v1760_v22 = vld [vmem:[#allocation2 + $0x68] sm:$0xff] }
   0xc   :  { %v114_v20 = vpack.c.bf16 %v43_v19, %v42_v18  ;;  %v1759_v23 = vld [vmem:[#allocation2 + $0x60] sm:$0xff]  ;;  %v45_v25 = vld [vmem:[%s2539_s0 + $0x68] sm:$0xff]  ;;  %v1758_v26 = vld [vmem:[#allocation2 + $0x58] sm:$0xff] }
   0xd   :  { %v44_v24 = vld [vmem:[%s2539_s0 + $0x60] sm:$0xff]  ;;  %v1757_v28 = vld [vmem:[#allocation2 + $0x50] sm:$0xff]  ;;  %v1756_v29 = vld [vmem:[#allocation2 + $0x48] sm:$0xff] }
   0xe   :  { %1599 = vmatmul.msk.bf16.vlgmr.msra.gmra.mxu0 %vm131_vm0, %v109_v4  ;;  %v115_v27 = vpack.c.bf16 %v45_v25, %v44_v24  ;;  %v1755_v30 = vld [vmem:[#allocation2 + $0x40] sm:$0xff]  ;;  %v46_v31 = vld [vmem:[%s2539_s0 + $0x70] sm:$0xff]  ;;  %v47_v32 = vld [vmem:[%s2539_s0 + $0x78] sm:$0xff] }
   0xf   :  { %288 = vmatpush.bf16.msra.mxu1 %v1761_v21  ;;  %v116_v33 = vpack.c.bf16 %v47_v32, %v46_v31  ;;  %v48_v34 = vld [vmem:[%s2539_s0 + $0x80] sm:$0xff]  ;;  %v1770_v12 = vld [vmem:[#allocation2 + $0xb8] sm:$0xff]  ;;  %v1768_v18 = vld [vmem:[#allocation2 + $0xa8] sm:$0xff] }
  0x10   :  { %v117_v35 = vpack.c.bf16 %v48_v34, %v48_v34  ;;  %v2056_v37 = vld [vmem:[%s2541_s2] ss:$0 sm:$0xff]  ;;  %415 = vmatpush.bf16.msra.mxu2 %v1770_v12 }
  0x11   :  { %v1767_v19 = vld [vmem:[#allocation2 + $0xa0] sm:$0xff] }
  0x13   :  { %289 = vmatpush.bf16.msra.mxu1 %v1760_v22 }
  0x17   :  { %290 = vmatpush.bf16.msra.mxu1 %v1759_v23  ;;  %v1766_v23 = vld [vmem:[#allocation2 + $0x98] sm:$0xff] }
  0x1b   :  { %291 = vmatpush.bf16.msra.mxu1 %v1758_v26 }
  0x1e   :  { %1600 = vmatmul.msk.bf16.gmra.mxu0 %vm131_vm0, %v110_v7 }
  0x1f   :  { %292 = vmatpush.bf16.msra.mxu1 %v1757_v28 }
  0x23   :  { %293 = vmatpush.bf16.msra.mxu1 %v1756_v29  ;;  %v1764_v29 = vld [vmem:[#allocation2 + $0x88] sm:$0xff] }
  0x27   :  { %294 = vmatpush.bf16.msra.mxu1 %v1755_v30  ;;  %v1763_v30 = vld [vmem:[#allocation2 + $0x80] sm:$0xff] }
  0x2e   :  { %1601 = vmatmul.msk.bf16.gmra.mxu0 %vm131_vm0, %v111_v10 }
  0x3e   :  { %1602 = vmatmul.msk.bf16.gmra.mxu0 %vm131_vm0, %v112_v13 }
  0x4e   :  { %1603 = vmatmul.msk.bf16.gmra.mxu0 %vm131_vm0, %v113_v16  ;;  %v1769_v16 = vld [vmem:[#allocation2 + $0xb0] sm:$0xff] }
  0x4f   :  { %416 = vmatpush.bf16.msra.mxu2 %v1769_v16 }
  0x53   :  { %417 = vmatpush.bf16.msra.mxu2 %v1768_v18 }
  0x57   :  { %418 = vmatpush.bf16.msra.mxu2 %v1767_v19 }
  0x5b   :  { %419 = vmatpush.bf16.msra.mxu2 %v1766_v23  ;;  %v1777_v23 = vld [vmem:[#allocation2 + $0xf0] sm:$0xff] }
  0x5e   :  { %1604 = vmatmul.msk.bf16.gmra.mxu0 %vm131_vm0, %v114_v20 }
  0x6e   :  { %1605 = vmatmul.msk.bf16.gmra.mxu0 %vm131_vm0, %v115_v27  ;;  %v1765_v27 = vld [vmem:[#allocation2 + $0x90] sm:$0xff] }
  0x6f   :  { %420 = vmatpush.bf16.msra.mxu2 %v1765_v27 }
  0x73   :  { %421 = vmatpush.bf16.msra.mxu2 %v1764_v29 }
  0x77   :  { %422 = vmatpush.bf16.msra.mxu2 %v1763_v30 }
  0x7e   :  { %1606 = vmatmul.msk.bf16.gmra.mxu0 %vm131_vm0, %v116_v33 }
  0x8b   :  { %v168_v36 = vpop.f32.mrf.mxu0 }
  0x8c   :  { %v169_v38 = vadd.f32 %v2056_v37, %v168_v36 }
  0x8e   :  { %1607 = vmatmul.msk.bf16.gmra.mxu0 %vm131_vm0, %v117_v35  ;;  %v212_v41 = vmax.f32 %v169_v38, 0.0 }
  0x93   :  { %v170_v39 = vpop.f32.mrf.mxu0 }
  0x94   :  { %v171_v40 = vadd.f32 %v2056_v37, %v170_v39 }
  0x96   :  { %v213_v42 = vmax.f32 %v171_v40, 0.0 }
  0x98   :  { %v229_v43 = vpack.c.bf16 %v213_v42, %v212_v41 }
  0x9a   :  { %295 = vmatmul.bf16.vlgmr.msra.gmra.mxu1 %v229_v43 }
  0x9b   :  { %v173_v44 = vpop.f32.mrf.mxu0 }
  0x9c   :  { %v174_v45 = vadd.f32 %v2056_v37, %v173_v44  ;;  %v2079_v44 = vld [vmem:[%s2541_s2 + $0x1] ss:$0 sm:$0xff] }
  0x9e   :  { %v214_v48 = vmax.f32 %v174_v45, 0.0 }
  0xa3   :  { %v175_v46 = vpop.f32.mrf.mxu0 }
  0xa4   :  { %v176_v47 = vadd.f32 %v2056_v37, %v175_v46 }
  0xa6   :  { %v215_v49 = vmax.f32 %v176_v47, 0.0 }
  0xa8   :  { %v230_v50 = vpack.c.bf16 %v215_v49, %v214_v48 }
  0xaa   :  { %300 = vmatmul.bf16.gmra.mxu1 %v230_v50 }
  0xab   :  { %v178_v51 = vpop.f32.mrf.mxu0 }
  0xac   :  { %v179_v52 = vadd.f32 %v2056_v37, %v178_v51 }
  0xae   :  { %v216_v55 = vmax.f32 %v179_v52, 0.0 }
  0xb3   :  { %v180_v53 = vpop.f32.mrf.mxu0 }
  0xb4   :  { %v181_v54 = vadd.f32 %v2056_v37, %v180_v53 }
  0xb6   :  { %v217_v56 = vmax.f32 %v181_v54, 0.0 }
  0xb8   :  { %v231_v57 = vpack.c.bf16 %v217_v56, %v216_v55 }
  0xba   :  { %305 = vmatmul.bf16.gmra.mxu1 %v231_v57 }
  0xbb   :  { %v183_v58 = vpop.f32.mrf.mxu0 }
  0xbc   :  { %v184_v59 = vadd.f32 %v2056_v37, %v183_v58 }
  0xbe   :  { %v218_v62 = vmax.f32 %v184_v59, 0.0 }
  0xc3   :  { %v185_v60 = vpop.f32.mrf.mxu0 }
  0xc4   :  { %v186_v61 = vadd.f32 %v2056_v37, %v185_v60 }
  0xc6   :  { %v219_v63 = vmax.f32 %v186_v61, 0.0 }
  0xc8   :  { %v232_v0 = vpack.c.bf16 %v219_v63, %v218_v62 }
  0xca   :  { %310 = vmatmul.bf16.gmra.mxu1 %v232_v0 }
  0xcb   :  { %v188_v1 = vpop.f32.mrf.mxu0 }
  0xcc   :  { %v189_v2 = vadd.f32 %v2056_v37, %v188_v1 }
  0xce   :  { %v220_v5 = vmax.f32 %v189_v2, 0.0 }
  0xd3   :  { %v190_v3 = vpop.f32.mrf.mxu0 }
  0xd4   :  { %v191_v4 = vadd.f32 %v2056_v37, %v190_v3 }
  0xd6   :  { %v221_v6 = vmax.f32 %v191_v4, 0.0 }
  0xd8   :  { %v233_v7 = vpack.c.bf16 %v221_v6, %v220_v5 }
  0xda   :  { %315 = vmatmul.bf16.gmra.mxu1 %v233_v7 }
  0xdb   :  { %v193_v8 = vpop.f32.mrf.mxu0 }
  0xdc   :  { %v194_v9 = vadd.f32 %v2056_v37, %v193_v8 }
  0xde   :  { %v222_v13 = vmax.f32 %v194_v9, 0.0 }
  0xe3   :  { %v195_v10 = vpop.f32.mrf.mxu0 }
  0xe4   :  { %v196_v11 = vadd.f32 %v2056_v37, %v195_v10 }
  0xe6   :  { %v223_v14 = vmax.f32 %v196_v11, 0.0 }
  0xe8   :  { %v234_v15 = vpack.c.bf16 %v223_v14, %v222_v13 }
  0xea   :  { %320 = vmatmul.bf16.gmra.mxu1 %v234_v15 }
  0xeb   :  { %v198_v17 = vpop.f32.mrf.mxu0 }
  0xec   :  { %v199_v20 = vadd.f32 %v2056_v37, %v198_v17 }
  0xee   :  { %v224_v24 = vmax.f32 %v199_v20, 0.0 }
  0xf3   :  { %v200_v21 = vpop.f32.mrf.mxu0 }
  0xf4   :  { %v201_v22 = vadd.f32 %v2056_v37, %v200_v21  ;;  %v1778_v21 = vld [vmem:[#allocation2 + $0xf8] sm:$0xff] }
  0xf5   :  { %579 = vmatpush.bf16.msra.mxu3 %v1778_v21 }
  0xf6   :  { %v225_v25 = vmax.f32 %v201_v22, 0.0 }
  0xf8   :  { %v235_v26 = vpack.c.bf16 %v225_v25, %v224_v24  ;;  %v1776_v24 = vld [vmem:[#allocation2 + $0xe8] sm:$0xff] }
  0xf9   :  { %580 = vmatpush.bf16.msra.mxu3 %v1777_v23 }
  0xfa   :  { %325 = vmatmul.bf16.gmra.mxu1 %v235_v26 }
  0xfb   :  { %v203_v28 = vpop.f32.mrf.mxu0 }
  0xfc   :  { %v204_v31 = vadd.f32 %v2056_v37, %v203_v28 }
  0xfd   :  { %581 = vmatpush.bf16.msra.mxu3 %v1776_v24 }
  0xfe   :  { %v226_v34 = vmax.f32 %v204_v31, 0.0 }
 0x103   :  { %v205_v32 = vpop.f32.mrf.mxu0 }
 0x104   :  { %v206_v33 = vadd.f32 %v2056_v37, %v205_v32  ;;  %v1775_v32 = vld [vmem:[#allocation2 + $0xe0] sm:$0xff] }
 0x105   :  { %582 = vmatpush.bf16.msra.mxu3 %v1775_v32 }
 0x106   :  { %v227_v35 = vmax.f32 %v206_v33, 0.0  ;;  %v1774_v33 = vld [vmem:[#allocation2 + $0xd8] sm:$0xff] }
 0x108   :  { %v236_v36 = vpack.c.bf16 %v227_v35, %v226_v34 }
 0x109   :  { %583 = vmatpush.bf16.msra.mxu3 %v1774_v33 }
 0x10a   :  { %330 = vmatmul.bf16.gmra.mxu1 %v236_v36  ;;  %v1773_v36 = vld [vmem:[#allocation2 + $0xd0] sm:$0xff] }
 0x10b   :  { %v208_v38 = vpop.f32.mrf.mxu0 }
 0x10c   :  { %v209_v39 = vadd.f32 %v2056_v37, %v208_v38 }
 0x10d   :  { %584 = vmatpush.bf16.msra.mxu3 %v1773_v36 }
 0x10e   :  { %v228_v40 = vmax.f32 %v209_v39, 0.0 }
 0x110   :  { %v237_v42 = vpack.c.bf16 %v228_v40, %v228_v40 }
 0x113   :  { %v210_v41 = vpop.f32.mrf.mxu0 }
 0x114   :  { %v1772_v41 = vld [vmem:[#allocation2 + $0xc8] sm:$0xff] }
 0x115   :  { %585 = vmatpush.bf16.msra.mxu3 %v1772_v41 }
 0x117   :  { %v296_v43 = vpop.f32.mrf.mxu1 }
 0x118   :  { %v297_v45 = vadd.f32 %v2079_v44, %v296_v43 }
 0x11a   :  { %335 = vmatmul.bf16.gmra.mxu1 %v237_v42  ;;  %v340_v48 = vmax.f32 %v297_v45, 0.0  ;;  %v1771_v45 = vld [vmem:[#allocation2 + $0xc0] sm:$0xff] }
 0x11b   :  { %586 = vmatpush.bf16.msra.mxu3 %v1771_v45 }
 0x11f   :  { %v298_v46 = vpop.f32.mrf.mxu1 }
 0x120   :  { %v299_v47 = vadd.f32 %v2079_v44, %v298_v46 }
 0x122   :  { %v341_v49 = vmax.f32 %v299_v47, 0.0 }
 0x124   :  { %v357_v50 = vpack.c.bf16 %v341_v49, %v340_v48 }
 0x126   :  { %423 = vmatmul.bf16.vlgmr.msra.gmra.mxu2 %v357_v50  ;;  %v2101_v50 = vld [vmem:[%s2541_s2 + $0x2] ss:$0 sm:$0xff] }
 0x127   :  { %v301_v37 = vpop.f32.mrf.mxu1 }
 0x128   :  { %v302_v51 = vadd.f32 %v2079_v44, %v301_v37 }
 0x12a   :  { %v342_v54 = vmax.f32 %v302_v51, 0.0 }
 0x12f   :  { %v303_v52 = vpop.f32.mrf.mxu1 }
 0x130   :  { %v304_v53 = vadd.f32 %v2079_v44, %v303_v52 }
 0x132   :  { %v343_v55 = vmax.f32 %v304_v53, 0.0  ;;  %v2107_v53 = vld [vmem:[%s2541_s2 + $0x3] ss:$0 sm:$0xff] }
 0x134   :  { %v358_v56 = vpack.c.bf16 %v343_v55, %v342_v54 }
 0x136   :  { %428 = vmatmul.bf16.gmra.mxu2 %v358_v56 }
 0x137   :  { %v306_v57 = vpop.f32.mrf.mxu1 }
 0x138   :  { %v307_v58 = vadd.f32 %v2079_v44, %v306_v57  ;;  %v2114_v57 = vld [vmem:[%s2541_s2 + $0x4] ss:$0 sm:$0xff] }
 0x13a   :  { %v344_v61 = vmax.f32 %v307_v58, 0.0 }
 0x13f   :  { %v308_v59 = vpop.f32.mrf.mxu1 }
 0x140   :  { %v309_v60 = vadd.f32 %v2079_v44, %v308_v59 }
 0x142   :  { %v345_v62 = vmax.f32 %v309_v60, 0.0 }
 0x144   :  { %v359_v63 = vpack.c.bf16 %v345_v62, %v344_v61 }
 0x146   :  { %433 = vmatmul.bf16.gmra.mxu2 %v359_v63 }
 0x147   :  { %v311_v0 = vpop.f32.mrf.mxu1 }
 0x148   :  { %v312_v1 = vadd.f32 %v2079_v44, %v311_v0 }
 0x14a   :  { %v346_v4 = vmax.f32 %v312_v1, 0.0 }
 0x14f   :  { %v313_v2 = vpop.f32.mrf.mxu1 }
 0x150   :  { %v314_v3 = vadd.f32 %v2079_v44, %v313_v2 }
 0x152   :  { %v347_v5 = vmax.f32 %v314_v3, 0.0 }
 0x154   :  { %v360_v6 = vpack.c.bf16 %v347_v5, %v346_v4 }
 0x156   :  { %438 = vmatmul.bf16.gmra.mxu2 %v360_v6 }
 0x157   :  { %v316_v7 = vpop.f32.mrf.mxu1 }
 0x158   :  { %v317_v8 = vadd.f32 %v2079_v44, %v316_v7 }
 0x15a   :  { %v348_v11 = vmax.f32 %v317_v8, 0.0 }
 0x15f   :  { %v318_v9 = vpop.f32.mrf.mxu1 }
 0x160   :  { %v319_v10 = vadd.f32 %v2079_v44, %v318_v9 }
 0x162   :  { %v349_v12 = vmax.f32 %v319_v10, 0.0 }
 0x164   :  { %v361_v13 = vpack.c.bf16 %v349_v12, %v348_v11 }
 0x166   :  { %443 = vmatmul.bf16.gmra.mxu2 %v361_v13 }
 0x167   :  { %v321_v14 = vpop.f32.mrf.mxu1 }
 0x168   :  { %v322_v15 = vadd.f32 %v2079_v44, %v321_v14 }
 0x16a   :  { %v350_v18 = vmax.f32 %v322_v15, 0.0 }
 0x16f   :  { %v323_v16 = vpop.f32.mrf.mxu1 }
 0x170   :  { %v324_v17 = vadd.f32 %v2079_v44, %v323_v16 }
 0x172   :  { %v351_v19 = vmax.f32 %v324_v17, 0.0 }
 0x174   :  { %v362_v20 = vpack.c.bf16 %v351_v19, %v350_v18 }
 0x176   :  { %448 = vmatmul.bf16.gmra.mxu2 %v362_v20 }
 0x177   :  { %v326_v22 = vpop.f32.mrf.mxu1 }
 0x178   :  { %v327_v25 = vadd.f32 %v2079_v44, %v326_v22 }
 0x17a   :  { %v352_v28 = vmax.f32 %v327_v25, 0.0 }
 0x17f   :  { %v328_v26 = vpop.f32.mrf.mxu1 }
 0x180   :  { %v329_v27 = vadd.f32 %v2079_v44, %v328_v26 }
 0x182   :  { %v353_v29 = vmax.f32 %v329_v27, 0.0 }
 0x184   :  { %v363_v30 = vpack.c.bf16 %v353_v29, %v352_v28 }
 0x186   :  { %453 = vmatmul.bf16.gmra.mxu2 %v363_v30 }
 0x187   :  { %v331_v31 = vpop.f32.mrf.mxu1 }
 0x188   :  { %v332_v34 = vadd.f32 %v2079_v44, %v331_v31 }
 0x18a   :  { %v354_v39 = vmax.f32 %v332_v34, 0.0 }
 0x18f   :  { %v333_v35 = vpop.f32.mrf.mxu1 }
 0x190   :  { %v334_v38 = vadd.f32 %v2079_v44, %v333_v35 }
 0x192   :  { %v355_v40 = vmax.f32 %v334_v38, 0.0 }
 0x194   :  { %v364_v42 = vpack.c.bf16 %v355_v40, %v354_v39 }
 0x196   :  { %458 = vmatmul.bf16.gmra.mxu2 %v364_v42 }
 0x197   :  { %v336_v43 = vpop.f32.mrf.mxu1 }
 0x198   :  { %v337_v46 = vadd.f32 %v2079_v44, %v336_v43 }
 0x19a   :  { %v356_v47 = vmax.f32 %v337_v46, 0.0 }
 0x19c   :  { %v365_v49 = vpack.c.bf16 %v356_v47, %v356_v47 }
 0x19f   :  { %v338_v48 = vpop.f32.mrf.mxu1 }
 0x1a6   :  { %463 = vmatmul.bf16.gmra.mxu2 %v365_v49 }
 0x1a9   :  { %v424_v37 = vpop.f32.mrf.mxu2 }
 0x1aa   :  { %v425_v51 = vadd.f32 %v2101_v50, %v424_v37 }
 0x1ac   :  { %v468_v52 = vmax.f32 %v425_v51, 0.0 }
 0x1ae   :  { %v486_v55 = vmul.f32 %v2107_v53, %v468_v52 }
 0x1b0   :  { %v2118_v59 = vadd.f32 %v2114_v57, %v486_v55 }
 0x1b1   :  { %v426_v54 = vpop.f32.mrf.mxu2 }
 0x1b2   :  { %v427_v44 = vadd.f32 %v2101_v50, %v426_v54 }
 0x1b4   :  { %v469_v56 = vmax.f32 %v427_v44, 0.0 }
 0x1b6   :  { %v487_v58 = vmul.f32 %v2107_v53, %v469_v56 }
 0x1b8   :  { %v2121_v60 = vadd.f32 %v2114_v57, %v487_v58 }
 0x1b9   :  { %v429_v61 = vpop.f32.mrf.mxu2 }
 0x1ba   :  { %v521_v62 = vpack.c.bf16 %v2121_v60, %v2118_v59  ;;  %v430_v63 = vadd.f32 %v2101_v50, %v429_v61 }
 0x1bc   :  { %587 = vmatmul.bf16.vlgmr.msra.gmra.mxu3 %v521_v62  ;;  %v470_v0 = vmax.f32 %v430_v63, 0.0 }
 0x1be   :  { %v488_v3 = vmul.f32 %v2107_v53, %v470_v0 }
 0x1c0   :  { %v2130_v6 = vadd.f32 %v2114_v57, %v488_v3 }
 0x1c1   :  { %v431_v1 = vpop.f32.mrf.mxu2 }
 0x1c2   :  { %v432_v2 = vadd.f32 %v2101_v50, %v431_v1 }
 0x1c4   :  { %v471_v4 = vmax.f32 %v432_v2, 0.0 }
 0x1c6   :  { %v489_v5 = vmul.f32 %v2107_v53, %v471_v4 }
 0x1c8   :  { %v2133_v7 = vadd.f32 %v2114_v57, %v489_v5 }
 0x1c9   :  { %v434_v8 = vpop.f32.mrf.mxu2 }
 0x1ca   :  { %v522_v9 = vpack.c.bf16 %v2133_v7, %v2130_v6  ;;  %v435_v10 = vadd.f32 %v2101_v50, %v434_v8 }
 0x1cc   :  { %592 = vmatmul.bf16.gmra.mxu3 %v522_v9  ;;  %v472_v11 = vmax.f32 %v435_v10, 0.0 }
 0x1ce   :  { %v490_v14 = vmul.f32 %v2107_v53, %v472_v11 }
 0x1d0   :  { %v2142_v17 = vadd.f32 %v2114_v57, %v490_v14 }
 0x1d1   :  { %v436_v12 = vpop.f32.mrf.mxu2 }
 0x1d2   :  { %v437_v13 = vadd.f32 %v2101_v50, %v436_v12 }
 0x1d4   :  { %v473_v15 = vmax.f32 %v437_v13, 0.0 }
 0x1d6   :  { %v491_v16 = vmul.f32 %v2107_v53, %v473_v15 }
 0x1d8   :  { %v2145_v18 = vadd.f32 %v2114_v57, %v491_v16 }
 0x1d9   :  { %v439_v19 = vpop.f32.mrf.mxu2 }
 0x1da   :  { %v523_v20 = vpack.c.bf16 %v2145_v18, %v2142_v17  ;;  %v440_v21 = vadd.f32 %v2101_v50, %v439_v19 }
 0x1dc   :  { %597 = vmatmul.bf16.gmra.mxu3 %v523_v20  ;;  %v474_v22 = vmax.f32 %v440_v21, 0.0 }
 0x1de   :  { %v492_v25 = vmul.f32 %v2107_v53, %v474_v22 }
 0x1e0   :  { %v2154_v28 = vadd.f32 %v2114_v57, %v492_v25 }
 0x1e1   :  { %v441_v23 = vpop.f32.mrf.mxu2 }
 0x1e2   :  { %v442_v24 = vadd.f32 %v2101_v50, %v441_v23 }
 0x1e4   :  { %v475_v26 = vmax.f32 %v442_v24, 0.0 }
 0x1e6   :  { %v493_v27 = vmul.f32 %v2107_v53, %v475_v26 }
 0x1e8   :  { %v2157_v29 = vadd.f32 %v2114_v57, %v493_v27  ;;  %v2219_v27 = vld [vmem:[%s2541_s2 + $0x5] ss:$0 sm:$0xff] }
 0x1e9   :  { %v444_v30 = vpop.f32.mrf.mxu2 }
 0x1ea   :  { %v524_v31 = vpack.c.bf16 %v2157_v29, %v2154_v28  ;;  %v445_v32 = vadd.f32 %v2101_v50, %v444_v30 }
 0x1ec   :  { %602 = vmatmul.bf16.gmra.mxu3 %v524_v31  ;;  %v476_v33 = vmax.f32 %v445_v32, 0.0 }
 0x1ee   :  { %v494_v36 = vmul.f32 %v2107_v53, %v476_v33 }
 0x1f0   :  { %v2166_v40 = vadd.f32 %v2114_v57, %v494_v36 }
 0x1f1   :  { %v446_v34 = vpop.f32.mrf.mxu2 }
 0x1f2   :  { %v447_v35 = vadd.f32 %v2101_v50, %v446_v34 }
 0x1f4   :  { %v477_v38 = vmax.f32 %v447_v35, 0.0 }
 0x1f6   :  { %v495_v39 = vmul.f32 %v2107_v53, %v477_v38 }
 0x1f8   :  { %v2169_v41 = vadd.f32 %v2114_v57, %v495_v39 }
 0x1f9   :  { %v449_v42 = vpop.f32.mrf.mxu2 }
 0x1fa   :  { %v525_v43 = vpack.c.bf16 %v2169_v41, %v2166_v40  ;;  %v450_v45 = vadd.f32 %v2101_v50, %v449_v42 }
 0x1fc   :  { %607 = vmatmul.bf16.gmra.mxu3 %v525_v43  ;;  %v478_v46 = vmax.f32 %v450_v45, 0.0 }
 0x1fe   :  { %v496_v49 = vmul.f32 %v2107_v53, %v478_v46 }
 0x200   :  { %v2178_v52 = vadd.f32 %v2114_v57, %v496_v49 }
 0x201   :  { %v451_v47 = vpop.f32.mrf.mxu2 }
 0x202   :  { %v452_v48 = vadd.f32 %v2101_v50, %v451_v47 }
 0x204   :  { %v479_v37 = vmax.f32 %v452_v48, 0.0 }
 0x206   :  { %v497_v51 = vmul.f32 %v2107_v53, %v479_v37 }
 0x208   :  { %v2181_v54 = vadd.f32 %v2114_v57, %v497_v51 }
 0x209   :  { %v454_v44 = vpop.f32.mrf.mxu2 }
 0x20a   :  { %v526_v55 = vpack.c.bf16 %v2181_v54, %v2178_v52  ;;  %v455_v56 = vadd.f32 %v2101_v50, %v454_v44 }
 0x20c   :  { %612 = vmatmul.bf16.gmra.mxu3 %v526_v55  ;;  %v480_v58 = vmax.f32 %v455_v56, 0.0 }
 0x20e   :  { %v498_v63 = vmul.f32 %v2107_v53, %v480_v58 }
 0x210   :  { %v2190_v2 = vadd.f32 %v2114_v57, %v498_v63 }
 0x211   :  { %v456_v61 = vpop.f32.mrf.mxu2 }
 0x212   :  { %v457_v62 = vadd.f32 %v2101_v50, %v456_v61 }
 0x214   :  { %v481_v0 = vmax.f32 %v457_v62, 0.0 }
 0x216   :  { %v499_v1 = vmul.f32 %v2107_v53, %v481_v0 }
 0x218   :  { %v2193_v3 = vadd.f32 %v2114_v57, %v499_v1 }
 0x219   :  { %v459_v4 = vpop.f32.mrf.mxu2 }
 0x21a   :  { %v527_v5 = vpack.c.bf16 %v2193_v3, %v2190_v2  ;;  %v460_v8 = vadd.f32 %v2101_v50, %v459_v4 }
 0x21c   :  { %617 = vmatmul.bf16.gmra.mxu3 %v527_v5  ;;  %v482_v9 = vmax.f32 %v460_v8, 0.0 }
 0x21e   :  { %v500_v12 = vmul.f32 %v2107_v53, %v482_v9 }
 0x220   :  { %v2202_v15 = vadd.f32 %v2114_v57, %v500_v12 }
 0x221   :  { %v461_v10 = vpop.f32.mrf.mxu2 }
 0x222   :  { %v462_v11 = vadd.f32 %v2101_v50, %v461_v10 }
 0x224   :  { %v483_v13 = vmax.f32 %v462_v11, 0.0 }
 0x226   :  { %v501_v14 = vmul.f32 %v2107_v53, %v483_v13 }
 0x228   :  { %v2205_v16 = vadd.f32 %v2114_v57, %v501_v14 }
 0x229   :  { %v464_v19 = vpop.f32.mrf.mxu2 }
 0x22a   :  { %v465_v20 = vadd.f32 %v2101_v50, %v464_v19  ;;  %v528_v21 = vpack.c.bf16 %v2205_v16, %v2202_v15 }
 0x22c   :  { %v484_v22 = vmax.f32 %v465_v20, 0.0  ;;  %622 = vmatmul.bf16.gmra.mxu3 %v528_v21 }
 0x22e   :  { %v502_v23 = vmul.f32 %v2107_v53, %v484_v22  ;;  %v2225_v53 = vld [vmem:[%s2541_s2 + $0x6] ss:$0 sm:$0xff] }
 0x230   :  { %v2212_v25 = vadd.f32 %v2114_v57, %v502_v23 }
 0x231   :  { %v466_v24 = vpop.f32.mrf.mxu2 }
 0x232   :  { %v529_v26 = vpack.c.bf16 %v2212_v25, %v2212_v25 }
 0x23c   :  { %627 = vmatmul.bf16.gmra.mxu3 %v529_v26 }
 0x23f   :  { %v588_v50 = vpop.f32.mrf.mxu3 }
 0x240   :  { %v589_v30 = vadd.f32 %v2219_v27, %v588_v50 }
 0x242   :  { %v632_v31 = vmax.f32 %v589_v30, 0.0 }
 0x244   :  { %v650_v57 = vmul.f32 %v2225_v53, %v632_v31 }
 0x246   :  { %667 = vadd.xlane.f32.xlu1 %v650_v57 }
 0x247   :  { %v590_v32 = vpop.f32.mrf.mxu3 }
 0x248   :  { %v591_v33 = vadd.f32 %v2219_v27, %v590_v32 }
 0x24a   :  { %v633_v34 = vmax.f32 %v591_v33, 0.0 }
 0x24c   :  { %v651_v35 = vmul.f32 %v2225_v53, %v633_v34 }
 0x24e   :  { %669 = vadd.xlane.f32.xlu2 %v651_v35 }
 0x24f   :  { %v593_v36 = vpop.f32.mrf.mxu3 }
 0x250   :  { %v594_v38 = vadd.f32 %v2219_v27, %v593_v36 }
 0x252   :  { %v634_v39 = vmax.f32 %v594_v38, 0.0 }
 0x254   :  { %v652_v42 = vmul.f32 %v2225_v53, %v634_v39 }
 0x256   :  { %671 = vadd.xlane.f32.xlu0 %v652_v42 }
 0x257   :  { %v595_v43 = vpop.f32.mrf.mxu3 }
 0x258   :  { %v596_v45 = vadd.f32 %v2219_v27, %v595_v43 }
 0x25a   :  { %v635_v46 = vmax.f32 %v596_v45, 0.0 }
 0x25c   :  { %v653_v47 = vmul.f32 %v2225_v53, %v635_v46 }
 0x25e   :  { %673 = vadd.xlane.f32.xlu0 %v653_v47 }
 0x25f   :  { %v598_v48 = vpop.f32.mrf.mxu3 }
 0x260   :  { %v599_v49 = vadd.f32 %v2219_v27, %v598_v48 }
 0x262   :  { %v636_v37 = vmax.f32 %v599_v49, 0.0 }
 0x264   :  { %v654_v51 = vmul.f32 %v2225_v53, %v636_v37 }
 0x266   :  { %675 = vadd.xlane.f32.xlu1 %v654_v51 }
 0x267   :  { %v600_v44 = vpop.f32.mrf.mxu3 }
 0x268   :  { %v601_v55 = vadd.f32 %v2219_v27, %v600_v44 }
 0x26a   :  { %v637_v56 = vmax.f32 %v601_v55, 0.0 }
 0x26c   :  { %v655_v58 = vmul.f32 %v2225_v53, %v637_v56 }
 0x26e   :  { %677 = vadd.xlane.f32.xlu1 %v655_v58 }
 0x26f   :  { %v603_v61 = vpop.f32.mrf.mxu3 }
 0x270   :  { %v604_v62 = vadd.f32 %v2219_v27, %v603_v61 }
 0x272   :  { %v638_v63 = vmax.f32 %v604_v62, 0.0  ;;  %v1968_v62 = vmov 0  }
 0x273   :  { %1793 = vset.pattern.permute.xlu0 %v1968_v62  ;;  %1794 = vset.pattern.permute.xlu1 %v1968_v62 }
 0x274   :  { %v656_v0 = vmul.f32 %v2225_v53, %v638_v63  ;;  %v2265_v63 = vld [vmem:[%s2541_s2 + $0x9] ss:$0 sm:$0xff]  ;;  %1795 = vset.pattern.permute.xlu2 %v1968_v62 }
 0x276   :  { %679 = vadd.xlane.f32.xlu2 %v656_v0 }
 0x277   :  { %v605_v1 = vpop.f32.mrf.mxu3 }
 0x278   :  { %v606_v4 = vadd.f32 %v2219_v27, %v605_v1 }
 0x27a   :  { %v639_v5 = vmax.f32 %v606_v4, 0.0 }
 0x27c   :  { %v657_v8 = vmul.f32 %v2225_v53, %v639_v5 }
 0x27e   :  { %681 = vadd.xlane.f32.xlu2 %v657_v8 }
 0x27f   :  { %v608_v9 = vpop.f32.mrf.mxu3 }
 0x280   :  { %v609_v10 = vadd.f32 %v2219_v27, %v608_v9 }
 0x282   :  { %v640_v11 = vmax.f32 %v609_v10, 0.0 }
 0x284   :  { %v658_v12 = vmul.f32 %v2225_v53, %v640_v11 }
 0x286   :  { %683 = vadd.xlane.f32.xlu0 %v658_v12 }
 0x287   :  { %v610_v13 = vpop.f32.mrf.mxu3 }
 0x288   :  { %v611_v14 = vadd.f32 %v2219_v27, %v610_v13 }
 0x28a   :  { %v641_v19 = vmax.f32 %v611_v14, 0.0 }
 0x28c   :  { %v659_v20 = vmul.f32 %v2225_v53, %v641_v19 }
 0x28e   :  { %685 = vadd.xlane.f32.xlu0 %v659_v20 }
 0x28f   :  { %v613_v21 = vpop.f32.mrf.mxu3 }
 0x290   :  { %v614_v22 = vadd.f32 %v2219_v27, %v613_v21 }
 0x292   :  { %v642_v23 = vmax.f32 %v614_v22, 0.0 }
 0x294   :  { %v660_v24 = vmul.f32 %v2225_v53, %v642_v23 }
 0x296   :  { %687 = vadd.xlane.f32.xlu1 %v660_v24 }
 0x297   :  { %v615_v26 = vpop.f32.mrf.mxu3 }
 0x298   :  { %v616_v50 = vadd.f32 %v2219_v27, %v615_v26 }
 0x29a   :  { %v643_v30 = vmax.f32 %v616_v50, 0.0 }
 0x29c   :  { %v661_v31 = vmul.f32 %v2225_v53, %v643_v30 }
 0x29e   :  { %689 = vadd.xlane.f32.xlu2 %v661_v31 }
 0x29f   :  { %v618_v57 = vpop.f32.mrf.mxu3 }
 0x2a0   :  { %v619_v32 = vadd.f32 %v2219_v27, %v618_v57 }
 0x2a2   :  { %v644_v33 = vmax.f32 %v619_v32, 0.0 }
 0x2a4   :  { %v662_v34 = vmul.f32 %v2225_v53, %v644_v33 }
 0x2a6   :  { %691 = vadd.xlane.f32.xlu2 %v662_v34 }
 0x2a7   :  { %v620_v35 = vpop.f32.mrf.mxu3 }
 0x2a8   :  { %v621_v36 = vadd.f32 %v2219_v27, %v620_v35 }
 0x2aa   :  { %v645_v38 = vmax.f32 %v621_v36, 0.0 }
 0x2ac   :  { %v663_v39 = vmul.f32 %v2225_v53, %v645_v38 }
 0x2ae   :  { %693 = vadd.xlane.f32.xlu1 %v663_v39 }
 0x2af   :  { %v623_v42 = vpop.f32.mrf.mxu3 }
 0x2b0   :  { %v624_v43 = vadd.f32 %v2219_v27, %v623_v42 }
 0x2b2   :  { %v646_v45 = vmax.f32 %v624_v43, 0.0 }
 0x2b4   :  { %v664_v46 = vmul.f32 %v2225_v53, %v646_v45 }
 0x2b6   :  { %695 = vadd.xlane.f32.xlu1 %v664_v46 }
 0x2b7   :  { %v625_v47 = vpop.f32.mrf.mxu3 }
 0x2b8   :  { %v626_v48 = vadd.f32 %v2219_v27, %v625_v47 }
 0x2b9   :  { %v2267_v0 = vpop.xlane.xlu1 %667 }
 0x2ba   :  { %v647_v49 = vmax.f32 %v626_v48, 0.0 }
 0x2bc   :  { %v665_v37 = vmul.f32 %v2225_v53, %v647_v49 }
 0x2be   :  { %697 = vadd.xlane.f32.xlu0 %v665_v37 }
 0x2bf   :  { %v628_v51 = vpop.f32.mrf.mxu3 }
 0x2c0   :  { %v629_v44 = vadd.f32 %v2219_v27, %v628_v51 }
 0x2c1   :  { %v2271_v11 = vpop.xlane.xlu2 %669 }
 0x2c2   :  { %v648_v55 = vmax.f32 %v629_v44, 0.0 }
 0x2c4   :  { %v666_v56 = vmul.f32 %v2225_v53, %v648_v55 }
 0x2c6   :  { %699 = vadd.xlane.f32.xlu0 %v666_v56 }
 0x2c7   :  { %v630_v58 = vpop.f32.mrf.mxu3 }
 0x2c9   :  { %v2260_v61 = vpop.xlane.xlu0 %671 }
 0x2d1   :  { %v674_v1 = vpop.xlane.xlu0 %673 }
 0x2d2   :  { %v705_v27 = vadd.f32 %v2265_v63, %v674_v1 }
 0x2d4   :  { %v1707_v4 = vmul.f32 -1.442695, %v705_v27 }
 0x2d6   :  { %1807 = vpow2.f32 %v1707_v4 }
 0x2d9   :  { %v676_v53 = vpop.xlane.xlu1 %675 }
 0x2da   :  { %v706_v5 = vadd.f32 %v2265_v63, %v676_v53 }
 0x2dc   :  { %v1808_v8 = vpop.eup %1807  ;;  %v1708_v9 = vmul.f32 -1.442695, %v706_v5 }
 0x2dd   :  { %v773_v10 = vadd.f32 1.0, %v1808_v8 }
 0x2de   :  { %1809 = vpow2.f32 %v1708_v9 }
 0x2df   :  { %1811 = vrcp.f32 %v773_v10  ;;  %v843_v26 = vand.u32 2147483648, %v773_v10  ;;  %v841_v31 = vand.u32 2147483647, %v773_v10  ;;  %vm837_vm2 = vweird.f32 %v773_v10 }
 0x2e1   :  { %v678_v12 = vpop.xlane.xlu1 %677  ;;  %v844_v36 = vor.u32 1.1754944e-38, %v843_v26  ;;  %vm842_vm4 = vcmp.eq.f32.partialorder %v841_v31, 8.507059e+37 }
 0x2e2   :  { %v707_v13 = vadd.f32 %v2265_v63, %v678_v12 }
 0x2e4   :  { %v1810_v14 = vpop.eup %1809  ;;  %v1709_v19 = vmul.f32 -1.442695, %v707_v13 }
 0x2e5   :  { %v1812_v20 = vpop.eup %1811  ;;  %v774_v21 = vadd.f32 1.0, %v1810_v14 }
 0x2e6   :  { %1813 = vpow2.f32 %v1709_v19  ;;  %v833_v22 = vmul.f32 %v1812_v20, %v773_v10  ;;  %vm838_vm1 = vweird.f32 %v1812_v20 }
 0x2e7   :  { %1815 = vrcp.f32 %v774_v21  ;;  %vm839_vm3 = vmor %vm837_vm2, %vm838_vm1  ;;  %v858_v46 = vand.u32 2147483648, %v774_v21  ;;  %v856_v49 = vand.u32 2147483647, %v774_v21  ;;  %vm852_vm6 = vweird.f32 %v774_v21 }
 0x2e8   :  { %v834_v23 = vsub.f32 1.0, %v833_v22 }
 0x2e9   :  { %v680_v24 = vpop.xlane.xlu2 %679  ;;  %v859_v58 = vor.u32 1.1754944e-38, %v858_v46  ;;  %vm857_vm8 = vcmp.eq.f32.partialorder %v856_v49, 8.507059e+37 }
 0x2ea   :  { %v708_v50 = vadd.f32 %v2265_v63, %v680_v24  ;;  %v835_v30 = vmul.f32 %v1812_v20, %v834_v23 }
 0x2ec   :  { %v1814_v57 = vpop.eup %1813  ;;  %v1710_v32 = vmul.f32 -1.442695, %v708_v50  ;;  %v836_v33 = vadd.f32 %v1812_v20, %v835_v30 }
 0x2ed   :  { %v1816_v34 = vpop.eup %1815  ;;  %v775_v35 = vadd.f32 1.0, %v1814_v57 }
 0x2ee   :  { %1817 = vpow2.f32 %v1710_v32  ;;  %v840_v38 = vsel %vm839_vm3, %v1812_v20, %v836_v33  ;;  %v848_v39 = vmul.f32 %v1816_v34, %v774_v21  ;;  %vm853_vm5 = vweird.f32 %v1816_v34 }
 0x2ef   :  { %1819 = vrcp.f32 %v775_v35  ;;  %v845_v42 = vsel %vm842_vm4, %v844_v36, %v840_v38  ;;  %vm854_vm7 = vmor %vm852_vm6, %vm853_vm5  ;;  %v873_v5 = vand.u32 2147483648, %v775_v35  ;;  %v871_v10 = vand.u32 2147483647, %v775_v35 }
 0x2f0   :  { %1059 = vperm.xlu0 %1793, %v845_v42   ;;  %v849_v43 = vsub.f32 1.0, %v848_v39  ;;  %vm867_vm10 = vweird.f32 %v775_v35 }
 0x2f1   :  { %v682_v45 = vpop.xlane.xlu2 %681  ;;  %v874_v21 = vor.u32 1.1754944e-38, %v873_v5  ;;  %vm872_vm12 = vcmp.eq.f32.partialorder %v871_v10, 8.507059e+37 }
 0x2f2   :  { %v709_v47 = vadd.f32 %v2265_v63, %v682_v45  ;;  %v850_v48 = vmul.f32 %v1816_v34, %v849_v43 }
 0x2f4   :  { %v1818_v37 = vpop.eup %1817  ;;  %v1711_v51 = vmul.f32 -1.442695, %v709_v47  ;;  %v851_v44 = vadd.f32 %v1816_v34, %v850_v48 }
 0x2f5   :  { %v1820_v55 = vpop.eup %1819  ;;  %v776_v56 = vadd.f32 1.0, %v1818_v37 }
 0x2f6   :  { %1821 = vpow2.f32 %v1711_v51  ;;  %v855_v62 = vsel %vm854_vm7, %v1816_v34, %v851_v44  ;;  %v863_v1 = vmul.f32 %v1820_v55, %v775_v35  ;;  %vm868_vm9 = vweird.f32 %v1820_v55 }
 0x2f7   :  { %1823 = vrcp.f32 %v776_v56  ;;  %v860_v27 = vsel %vm857_vm8, %v859_v58, %v855_v62  ;;  %vm869_vm11 = vmor %vm867_vm10, %vm868_vm9  ;;  %v888_v30 = vand.u32 2147483648, %v776_v56  ;;  %v886_v32 = vand.u32 2147483647, %v776_v56 }
 0x2f8   :  { %1064 = vperm.xlu0 %1793, %v860_v27   ;;  %v864_v4 = vsub.f32 1.0, %v863_v1  ;;  %vm882_vm14 = vweird.f32 %v776_v56 }
 0x2f9   :  { %v684_v53 = vpop.xlane.xlu0 %683  ;;  %v889_v39 = vor.u32 1.1754944e-38, %v888_v30  ;;  %vm887_vm0 = vcmp.eq.f32.partialorder %v886_v32, 8.507059e+37 }
 0x2fa   :  { %v710_v8 = vadd.f32 %v2265_v63, %v684_v53  ;;  %v865_v9 = vmul.f32 %v1820_v55, %v864_v4 }
 0x2fc   :  { %v1822_v12 = vpop.eup %1821  ;;  %v1712_v13 = vmul.f32 -1.442695, %v710_v8  ;;  %v866_v14 = vadd.f32 %v1820_v55, %v865_v9 }
 0x2fd   :  { %v1824_v19 = vpop.eup %1823  ;;  %v777_v20 = vadd.f32 1.0, %v1822_v12 }
 0x2fe   :  { %1825 = vpow2.f32 %v1712_v13  ;;  %v870_v22 = vsel %vm869_vm11, %v1820_v55, %v866_v14  ;;  %v878_v23 = vmul.f32 %v1824_v19, %v776_v56  ;;  %vm883_vm13 = vweird.f32 %v1824_v19 }
 0x2ff   :  { %1827 = vrcp.f32 %v777_v20  ;;  %v875_v24 = vsel %vm872_vm12, %v874_v21, %v870_v22  ;;  %vm884_vm15 = vmor %vm882_vm14, %vm883_vm13  ;;  %v903_v48 = vand.u32 2147483648, %v777_v20  ;;  %v901_v51 = vand.u32 2147483647, %v777_v20 }
 0x300   :  { %1069 = vperm.xlu1 %1794, %v875_v24   ;;  %v879_v26 = vsub.f32 1.0, %v878_v23  ;;  %vm897_vm2 = vweird.f32 %v777_v20 }
 0x301   :  { %v686_v50 = vpop.xlane.xlu0 %685  ;;  %v904_v1 = vor.u32 1.1754944e-38, %v903_v48  ;;  %vm902_vm4 = vcmp.eq.f32.partialorder %v901_v51, 8.507059e+37 }
 0x302   :  { %v711_v31 = vadd.f32 %v2265_v63, %v686_v50  ;;  %v880_v57 = vmul.f32 %v1824_v19, %v879_v26 }
 0x304   :  { %v1826_v33 = vpop.eup %1825  ;;  %v1713_v34 = vmul.f32 -1.442695, %v711_v31  ;;  %v881_v35 = vadd.f32 %v1824_v19, %v880_v57 }
 0x305   :  { %v1828_v36 = vpop.eup %1827  ;;  %v778_v38 = vadd.f32 1.0, %v1826_v33 }
 0x306   :  { %1829 = vpow2.f32 %v1713_v34  ;;  %v885_v42 = vsel %vm884_vm15, %v1824_v19, %v881_v35  ;;  %v893_v43 = vmul.f32 %v1828_v36, %v777_v20  ;;  %vm898_vm1 = vweird.f32 %v1828_v36 }
 0x307   :  { %1831 = vrcp.f32 %v778_v38  ;;  %v890_v45 = vsel %vm887_vm0, %v889_v39, %v885_v42  ;;  %vm899_vm3 = vmor %vm897_vm2, %vm898_vm1  ;;  %v918_v9 = vand.u32 2147483648, %v778_v38  ;;  %v916_v13 = vand.u32 2147483647, %v778_v38 }
 0x308   :  { %1074 = vperm.xlu0 %1793, %v890_v45   ;;  %v894_v46 = vsub.f32 1.0, %v893_v43  ;;  %vm912_vm6 = vweird.f32 %v778_v38 }
 0x309   :  { %v688_v47 = vpop.xlane.xlu1 %687  ;;  %v919_v23 = vor.u32 1.1754944e-38, %v918_v9  ;;  %vm917_vm8 = vcmp.eq.f32.partialorder %v916_v13, 8.507059e+37 }
 0x30a   :  { %v712_v49 = vadd.f32 %v2265_v63, %v688_v47  ;;  %v895_v37 = vmul.f32 %v1828_v36, %v894_v46 }
 0x30c   :  { %v1830_v44 = vpop.eup %1829  ;;  %v1714_v55 = vmul.f32 -1.442695, %v712_v49  ;;  %v896_v56 = vadd.f32 %v1828_v36, %v895_v37 }
 0x30d   :  { %v1832_v58 = vpop.eup %1831  ;;  %v779_v62 = vadd.f32 1.0, %v1830_v44 }
 0x30e   :  { %1833 = vpow2.f32 %v1714_v55  ;;  %v900_v27 = vsel %vm899_vm3, %v1828_v36, %v896_v56  ;;  %v908_v4 = vmul.f32 %v1832_v58, %v778_v38  ;;  %vm913_vm5 = vweird.f32 %v1832_v58 }
 0x30f   :  { %1835 = vrcp.f32 %v779_v62  ;;  %v905_v53 = vsel %vm902_vm4, %v904_v1, %v900_v27  ;;  %vm914_vm7 = vmor %vm912_vm6, %vm913_vm5  ;;  %v933_v57 = vand.u32 2147483648, %v779_v62  ;;  %v931_v34 = vand.u32 2147483647, %v779_v62 }
 0x310   :  { %1079 = vperm.xlu0 %1793, %v905_v53   ;;  %v909_v5 = vsub.f32 1.0, %v908_v4  ;;  %vm927_vm10 = vweird.f32 %v779_v62 }
 0x311   :  { %v690_v8 = vpop.xlane.xlu2 %689  ;;  %v934_v43 = vor.u32 1.1754944e-38, %v933_v57  ;;  %vm932_vm12 = vcmp.eq.f32.partialorder %v931_v34, 8.507059e+37 }
 0x312   :  { %v713_v10 = vadd.f32 %v2265_v63, %v690_v8  ;;  %v910_v12 = vmul.f32 %v1832_v58, %v909_v5 }
 0x314   :  { %v1834_v14 = vpop.eup %1833  ;;  %v1715_v19 = vmul.f32 -1.442695, %v713_v10  ;;  %v911_v20 = vadd.f32 %v1832_v58, %v910_v12 }
 0x315   :  { %v1836_v21 = vpop.eup %1835  ;;  %v780_v22 = vadd.f32 1.0, %v1834_v14 }
 0x316   :  { %1837 = vpow2.f32 %v1715_v19  ;;  %v915_v24 = vsel %vm914_vm7, %v1832_v58, %v911_v20  ;;  %v923_v26 = vmul.f32 %v1836_v21, %v779_v62  ;;  %vm928_vm9 = vweird.f32 %v1836_v21 }
 0x317   :  { %1839 = vrcp.f32 %v780_v22  ;;  %v920_v50 = vsel %vm917_vm8, %v919_v23, %v915_v24  ;;  %vm929_vm11 = vmor %vm927_vm10, %vm928_vm9  ;;  %v948_v37 = vand.u32 2147483648, %v780_v22  ;;  %v946_v55 = vand.u32 2147483647, %v780_v22 }
 0x318   :  { %1084 = vperm.xlu2 %1795, %v920_v50   ;;  %v924_v30 = vsub.f32 1.0, %v923_v26  ;;  %vm942_vm14 = vweird.f32 %v780_v22 }
 0x319   :  { %v692_v31 = vpop.xlane.xlu2 %691  ;;  %v949_v4 = vor.u32 1.1754944e-38, %v948_v37  ;;  %vm947_vm0 = vcmp.eq.f32.partialorder %v946_v55, 8.507059e+37 }
 0x31a   :  { %v714_v32 = vadd.f32 %v2265_v63, %v692_v31  ;;  %v925_v33 = vmul.f32 %v1836_v21, %v924_v30 }
 0x31c   :  { %v1838_v35 = vpop.eup %1837  ;;  %v1716_v36 = vmul.f32 -1.442695, %v714_v32  ;;  %v926_v38 = vadd.f32 %v1836_v21, %v925_v33 }
 0x31d   :  { %v1840_v39 = vpop.eup %1839  ;;  %v781_v42 = vadd.f32 1.0, %v1838_v35 }
 0x31e   :  { %1841 = vpow2.f32 %v1716_v36  ;;  %v930_v45 = vsel %vm929_vm11, %v1836_v21, %v926_v38  ;;  %v938_v46 = vmul.f32 %v1840_v39, %v780_v22  ;;  %vm943_vm13 = vweird.f32 %v1840_v39 }
 0x31f   :  { %1843 = vrcp.f32 %v781_v42  ;;  %v935_v47 = vsel %vm932_vm12, %v934_v43, %v930_v45  ;;  %vm944_vm15 = vmor %vm942_vm14, %vm943_vm13  ;;  %v963_v12 = vand.u32 2147483648, %v781_v42  ;;  %v961_v19 = vand.u32 2147483647, %v781_v42 }
 0x320   :  { %1089 = vperm.xlu2 %1795, %v935_v47   ;;  %v939_v48 = vsub.f32 1.0, %v938_v46  ;;  %vm957_vm2 = vweird.f32 %v781_v42 }
 0x321   :  { %v694_v49 = vpop.xlane.xlu1 %693  ;;  %v964_v26 = vor.u32 1.1754944e-38, %v963_v12  ;;  %vm962_vm4 = vcmp.eq.f32.partialorder %v961_v19, 8.507059e+37 }
 0x322   :  { %v715_v51 = vadd.f32 %v2265_v63, %v694_v49  ;;  %v940_v44 = vmul.f32 %v1840_v39, %v939_v48 }
 0x324   :  { %v1842_v56 = vpop.eup %1841  ;;  %v1717_v58 = vmul.f32 -1.442695, %v715_v51  ;;  %v941_v62 = vadd.f32 %v1840_v39, %v940_v44 }
 0x325   :  { %v1844_v1 = vpop.eup %1843  ;;  %v782_v27 = vadd.f32 1.0, %v1842_v56 }
 0x326   :  { %1845 = vpow2.f32 %v1717_v58  ;;  %v945_v53 = vsel %vm944_vm15, %v1840_v39, %v941_v62  ;;  %v953_v5 = vmul.f32 %v1844_v1, %v781_v42  ;;  %vm958_vm1 = vweird.f32 %v1844_v1 }
 0x327   :  { %1847 = vrcp.f32 %v782_v27  ;;  %v950_v8 = vsel %vm947_vm0, %v949_v4, %v945_v53  ;;  %vm959_vm3 = vmor %vm957_vm2, %vm958_vm1  ;;  %v978_v33 = vand.u32 2147483648, %v782_v27  ;;  %v976_v36 = vand.u32 2147483647, %v782_v27 }
 0x328   :  { %1094 = vperm.xlu1 %1794, %v950_v8   ;;  %v954_v9 = vsub.f32 1.0, %v953_v5  ;;  %vm972_vm6 = vweird.f32 %v782_v27 }
 0x329   :  { %v696_v10 = vpop.xlane.xlu1 %695  ;;  %v979_v46 = vor.u32 1.1754944e-38, %v978_v33  ;;  %vm977_vm8 = vcmp.eq.f32.partialorder %v976_v36, 8.507059e+37 }
 0x32a   :  { %v716_v13 = vadd.f32 %v2265_v63, %v696_v10  ;;  %v955_v14 = vmul.f32 %v1844_v1, %v954_v9 }
 0x32c   :  { %v1846_v20 = vpop.eup %1845  ;;  %v1718_v21 = vmul.f32 -1.442695, %v716_v13  ;;  %v956_v22 = vadd.f32 %v1844_v1, %v955_v14 }
 0x32d   :  { %v1848_v23 = vpop.eup %1847  ;;  %v783_v24 = vadd.f32 1.0, %v1846_v20 }
 0x32e   :  { %1849 = vpow2.f32 %v1718_v21  ;;  %v960_v50 = vsel %vm959_vm3, %v1844_v1, %v956_v22  ;;  %v968_v30 = vmul.f32 %v1848_v23, %v782_v27  ;;  %vm973_vm5 = vweird.f32 %v1848_v23 }
 0x32f   :  { %1851 = vrcp.f32 %v783_v24  ;;  %v965_v31 = vsel %vm962_vm4, %v964_v26, %v960_v50  ;;  %vm974_vm7 = vmor %vm972_vm6, %vm973_vm5  ;;  %v993_v44 = vand.u32 2147483648, %v783_v24  ;;  %v991_v58 = vand.u32 2147483647, %v783_v24 }
 0x330   :  { %1099 = vperm.xlu2 %1795, %v965_v31   ;;  %v969_v57 = vsub.f32 1.0, %v968_v30  ;;  %vm987_vm10 = vweird.f32 %v783_v24 }
 0x331   :  { %v698_v32 = vpop.xlane.xlu0 %697  ;;  %v994_v5 = vor.u32 1.1754944e-38, %v993_v44  ;;  %vm992_vm12 = vcmp.eq.f32.partialorder %v991_v58, 8.507059e+37 }
 0x332   :  { %v717_v34 = vadd.f32 %v2265_v63, %v698_v32  ;;  %v970_v35 = vmul.f32 %v1848_v23, %v969_v57 }
 0x334   :  { %v1850_v38 = vpop.eup %1849  ;;  %v1719_v39 = vmul.f32 -1.442695, %v717_v34  ;;  %v971_v42 = vadd.f32 %v1848_v23, %v970_v35 }
 0x335   :  { %v1852_v43 = vpop.eup %1851  ;;  %v784_v45 = vadd.f32 1.0, %v1850_v38 }
 0x336   :  { %1853 = vpow2.f32 %v1719_v39  ;;  %v975_v47 = vsel %vm974_vm7, %v1848_v23, %v971_v42  ;;  %v983_v48 = vmul.f32 %v1852_v43, %v783_v24  ;;  %vm988_vm9 = vweird.f32 %v1852_v43 }
 0x337   :  { %1855 = vrcp.f32 %v784_v45  ;;  %v980_v49 = vsel %vm977_vm8, %v979_v46, %v975_v47  ;;  %vm989_vm11 = vmor %vm987_vm10, %vm988_vm9  ;;  %v1008_v13 = vand.u32 2147483648, %v784_v45  ;;  %v1006_v19 = vand.u32 2147483647, %v784_v45 }
 0x338   :  { %1104 = vperm.xlu1 %1794, %v980_v49   ;;  %v984_v37 = vsub.f32 1.0, %v983_v48  ;;  %vm1002_vm14 = vweird.f32 %v784_v45 }
 0x339   :  { %v700_v51 = vpop.xlane.xlu0 %699  ;;  %v1009_v24 = vor.u32 1.1754944e-38, %v1008_v13  ;;  %vm1007_vm0 = vcmp.eq.f32.partialorder %v1006_v19, 8.507059e+37 }
 0x33a   :  { %v718_v55 = vadd.f32 %v2265_v63, %v700_v51  ;;  %v985_v56 = vmul.f32 %v1852_v43, %v984_v37 }
 0x33c   :  { %v1854_v62 = vpop.eup %1853  ;;  %v1720_v1 = vmul.f32 -1.442695, %v718_v55  ;;  %v986_v27 = vadd.f32 %v1852_v43, %v985_v56  ;;  %v704_v56 = vadd.f32 %v2265_v63, %v2260_v61 }
 0x33d   :  { %v1856_v4 = vpop.eup %1855  ;;  %v785_v53 = vadd.f32 1.0, %v1854_v62 }
 0x33e   :  { %1857 = vpow2.f32 %v1720_v1  ;;  %v990_v8 = vsel %vm989_vm11, %v1852_v43, %v986_v27  ;;  %v998_v9 = vmul.f32 %v1856_v4, %v784_v45  ;;  %vm1003_vm13 = vweird.f32 %v1856_v4 }
 0x33f   :  { %1859 = vrcp.f32 %v785_v53  ;;  %v995_v10 = vsel %vm992_vm12, %v994_v5, %v990_v8  ;;  %vm1004_vm15 = vmor %vm1002_vm14, %vm1003_vm13  ;;  %v1023_v57 = vand.u32 2147483648, %v785_v53  ;;  %v1021_v33 = vand.u32 2147483647, %v785_v53 }
 0x340   :  { %1109 = vperm.xlu1 %1794, %v995_v10   ;;  %v999_v12 = vsub.f32 1.0, %v998_v9  ;;  %vm1017_vm2 = vweird.f32 %v785_v53  ;;  %v1706_v58 = vmul.f32 -1.442695, %v704_v56  ;;  %v702_v27 = vadd.f32 %v2265_v63, %v2267_v0 }
 0x341   :  { %v1024_v36 = vor.u32 1.1754944e-38, %v1023_v57  ;;  %vm1022_vm4 = vcmp.eq.f32.partialorder %v1021_v33, 8.507059e+37 }
 0x342   :  { %v1000_v14 = vmul.f32 %v1856_v4, %v999_v12 }
 0x344   :  { %v1858_v20 = vpop.eup %1857  ;;  %v1001_v21 = vadd.f32 %v1856_v4, %v1000_v14 }
 0x345   :  { %v1860_v22 = vpop.eup %1859  ;;  %v786_v23 = vadd.f32 1.0, %v1858_v20 }
 0x346   :  { %v1005_v26 = vsel %vm1004_vm15, %v1856_v4, %v1001_v21  ;;  %v1013_v50 = vmul.f32 %v1860_v22, %v785_v53  ;;  %vm1018_vm1 = vweird.f32 %v1860_v22  ;;  %v1704_v4 = vmul.f32 -1.442695, %v702_v27 }
 0x347   :  { %1861 = vrcp.f32 %v786_v23  ;;  %v1010_v30 = vsel %vm1007_vm0, %v1009_v24, %v1005_v26  ;;  %vm1019_vm3 = vmor %vm1017_vm2, %vm1018_vm1  ;;  %v1038_v45 = vand.u32 2147483648, %v786_v23  ;;  %v1036_v47 = vand.u32 2147483647, %v786_v23 }
 0x348   :  { %1114 = vperm.xlu2 %1795, %v1010_v30   ;;  %v1014_v31 = vsub.f32 1.0, %v1013_v50  ;;  %vm1032_vm6 = vweird.f32 %v786_v23  ;;  %1863 = vpow2.f32 %v1706_v58 }
 0x349   :  { %v1039_v49 = vor.u32 1.1754944e-38, %v1038_v45  ;;  %vm1037_vm8 = vcmp.eq.f32.partialorder %v1036_v47, 8.507059e+37  ;;  %1865 = vpow2.f32 %v1704_v4 }
 0x34a   :  { %v1015_v32 = vmul.f32 %v1860_v22, %v1014_v31 }
 0x34c   :  { %v1016_v34 = vadd.f32 %v1860_v22, %v1015_v32 }
 0x34d   :  { %v1862_v35 = vpop.eup %1861 }
 0x34e   :  { %v1020_v38 = vsel %vm1019_vm3, %v1860_v22, %v1016_v34  ;;  %v1028_v39 = vmul.f32 %v1862_v35, %v786_v23  ;;  %vm1033_vm5 = vweird.f32 %v1862_v35  ;;  %v1864_v8 = vpop.eup %1863 }
 0x34f   :  { %v1025_v42 = vsel %vm1022_vm4, %v1024_v36, %v1020_v38  ;;  %vm1034_vm7 = vmor %vm1032_vm6, %vm1033_vm5  ;;  %v772_v10 = vadd.f32 1.0, %v1864_v8  ;;  %v1866_v14 = vpop.eup %1865 }
 0x350   :  { %1119 = vperm.xlu2 %1795, %v1025_v42   ;;  %v1029_v43 = vsub.f32 1.0, %v1028_v39  ;;  %v770_v20 = vadd.f32 1.0, %v1866_v14 }
 0x351   :  { %1867 = vrcp.f32 %v772_v10  ;;  %vm822_vm10 = vweird.f32 %v772_v10  ;;  %v826_v39 = vand.u32 2147483647, %v772_v10 }
 0x352   :  { %v1030_v46 = vmul.f32 %v1862_v35, %v1029_v43  ;;  %1869 = vrcp.f32 %v770_v20  ;;  %vm792_vm14 = vweird.f32 %v770_v20 }
 0x353   :  { %vm827_vm12 = vcmp.eq.f32.partialorder %v826_v39, 8.507059e+37 }
 0x354   :  { %v1031_v48 = vadd.f32 %v1862_v35, %v1030_v46 }
 0x356   :  { %v1035_v37 = vsel %vm1034_vm7, %v1862_v35, %v1031_v48 }
 0x357   :  { %v1040_v51 = vsel %vm1037_vm8, %v1039_v49, %v1035_v37  ;;  %v1868_v21 = vpop.eup %1867 }
 0x358   :  { %1124 = vperm.xlu0 %1793, %v1040_v51   ;;  %v818_v26 = vmul.f32 %v1868_v21, %v772_v10  ;;  %v1870_v31 = vpop.eup %1869  ;;  %vm823_vm9 = vweird.f32 %v1868_v21  ;;  %v796_v51 = vand.u32 2147483647, %v770_v20 }
 0x359   :  { %v788_v35 = vmul.f32 %v1870_v31, %v770_v20  ;;  %vm824_vm11 = vmor %vm822_vm10, %vm823_vm9  ;;  %vm793_vm13 = vweird.f32 %v1870_v31 }
 0x35a   :  { %v819_v30 = vsub.f32 1.0, %v818_v26  ;;  %vm794_vm15 = vmor %vm792_vm14, %vm793_vm13  ;;  %vm797_vm0 = vcmp.eq.f32.partialorder %v796_v51, 8.507059e+37 }
 0x35b   :  { %v789_v38 = vsub.f32 1.0, %v788_v35 }
 0x35c   :  { %v820_v34 = vmul.f32 %v1868_v21, %v819_v30 }
 0x35d   :  { %v790_v43 = vmul.f32 %v1870_v31, %v789_v38 }
 0x35e   :  { %v821_v36 = vadd.f32 %v1868_v21, %v820_v34 }
 0x35f   :  { %v791_v49 = vadd.f32 %v1870_v31, %v790_v43 }
 0x362   :  { %v2300_v12 = vpop.permute.xlu0 %1059 }
 0x36a   :  { %v2309_v22 = vpop.permute.xlu0 %1064 }
 0x372   :  { %v2285_v44 = vpop.permute.xlu2 %1084  ;;  %v2289_v62 = vpop.permute.xlu1 %1069 }
 0x37a   :  { %v1090_v55 = vpop.permute.xlu2 %1089  ;;  %v2318_v57 = vpop.permute.xlu0 %1074 }
 0x382   :  { %v1080_v42 = vpop.permute.xlu0 %1079 }
 0x38a   :  { %v1100_v1 = vpop.permute.xlu2 %1099 }
 0x38b   :  { %v2321_v32 = vmul.f32 %v1100_v1, %v2181_v54  ;;  %v825_v54 = vsel %vm824_vm11, %v1868_v21, %v821_v36  ;;  %v795_v1 = vsel %vm794_vm15, %v1870_v31, %v791_v49 }
 0x39a   :  { %v2293_v53 = vpop.permute.xlu1 %1094 }
 0x3a2   :  { %v1115_v5 = vpop.permute.xlu2 %1114 }
 0x3a3   :  { %v2296_v9 = vmul.f32 %v1115_v5, %v2202_v15 }
 0x3a5   :  { %v1165_v61 = vmul.f32 %v2296_v9, %v2296_v9 }
 0x3a7   :  { %1194 = vadd.xlane.f32.xlu2 %v1165_v61  ;;  %v2344_v61 = vmul.f32 %v2285_v44, %v2166_v40 }
 0x3aa   :  { %v1120_v13 = vpop.permute.xlu2 %1119  ;;  %v2302_v0 = vpop.permute.xlu1 %1104 }
 0x3ab   :  { %v2305_v19 = vmul.f32 %v1120_v13, %v2205_v16  ;;  %v703_v16 = vadd.f32 %v2265_v63, %v2271_v11  ;;  %v828_v63 = vand.u32 2147483648, %v772_v10  ;;  %v2326_v11 = vmul.f32 %v1090_v55, %v2169_v41 }
 0x3ac   :  { %v798_v41 = vand.u32 2147483648, %v770_v20  ;;  %v2331_v55 = vmul.f32 %v1080_v42, %v2157_v29  ;;  %v2348_v10 = vmul.f32 %v2302_v0, %v2190_v2  ;;  %v1159_v20 = vmul.f32 %v2344_v61, %v2344_v61 }
 0x3ad   :  { %v1166_v15 = vmul.f32 %v2305_v19, %v2305_v19  ;;  %v1705_v33 = vmul.f32 -1.442695, %v703_v16  ;;  %v829_v45 = vor.u32 1.1754944e-38, %v828_v63  ;;  %v1160_v47 = vmul.f32 %v2326_v11, %v2326_v11 }
 0x3ae   :  { %v799_v27 = vor.u32 1.1754944e-38, %v798_v41  ;;  %v1158_v29 = vmul.f32 %v2331_v55, %v2331_v55  ;;  %v1149_v40 = vpack.c.bf16 %v2348_v10, %v2321_v32  ;;  %v2362_v2 = vmul.f32 %v2289_v62, %v2145_v18 }
 0x3af   :  { %1196 = vadd.xlane.f32.xlu2 %v1166_v15  ;;  %1871 = vpow2.f32 %v1705_v33  ;;  %v830_v48 = vsel %vm827_vm12, %v829_v45, %v825_v54  ;;  %v2354_v15 = vmul.f32 %v2293_v53, %v2178_v52  ;;  %v2368_v52 = vmul.f32 %v2318_v57, %v2154_v28 }
 0x3b0   :  { %v800_v8 = vsel %vm797_vm0, %v799_v27, %v795_v1  ;;  %v1156_v53 = vmul.f32 %v2362_v2, %v2362_v2  ;;  %v2376_v18 = vmul.f32 %v2309_v22, %v2142_v17  ;;  %v2382_v16 = vmul.f32 %v2300_v12, %v2133_v7 }
 0x3b1   :  { %v1148_v0 = vpack.c.bf16 %v2354_v15, %v2326_v11  ;;  %v1146_v62 = vpack.c.bf16 %v2368_v52, %v2362_v2  ;;  %v1157_v31 = vmul.f32 %v2368_v52, %v2368_v52  ;;  %v1161_v7 = vmul.f32 %v2354_v15, %v2354_v15 }
 0x3b2   :  { %v1110_v23 = vpop.permute.xlu1 %1109  ;;  %v1145_v17 = vpack.c.bf16 %v2376_v18, %v2382_v16  ;;  %v1155_v33 = vmul.f32 %v2376_v18, %v2376_v18  ;;  %v1163_v12 = vmul.f32 %v2348_v10, %v2348_v10  ;;  %v1154_v34 = vmul.f32 %v2382_v16, %v2382_v16 }
 0x3b3   :  { %v2312_v24 = vmul.f32 %v1110_v23, %v2193_v3  ;;  %v1162_v3 = vmul.f32 %v2321_v32, %v2321_v32  ;;  %v1147_v23 = vpack.c.bf16 %v2344_v61, %v2331_v55 }
 0x3b5   :  { %v1164_v50 = vmul.f32 %v2312_v24, %v2312_v24  ;;  %v1872_v46 = vpop.eup %1871  ;;  %v1150_v13 = vpack.c.bf16 %v2296_v9, %v2312_v24 }
 0x3b6   :  { %v771_v37 = vadd.f32 1.0, %v1872_v46 }
 0x3b7   :  { %1192 = vadd.xlane.f32.xlu0 %v1164_v50 }
 0x3b8   :  { %1873 = vrcp.f32 %v771_v37  ;;  %v813_v50 = vand.u32 2147483648, %v771_v37  ;;  %vm807_vm2 = vweird.f32 %v771_v37  ;;  %v811_v28 = vand.u32 2147483647, %v771_v37 }
 0x3ba   :  { %v814_v22 = vor.u32 1.1754944e-38, %v813_v50  ;;  %vm812_vm4 = vcmp.eq.f32.partialorder %v811_v28, 8.507059e+37 }
 0x3bf   :  { %1188 = vadd.xlane.f32.xlu0 %v1162_v3 }
 0x3c7   :  { %1054 = vperm.xlu2 %1795, %v830_v48   ;;  %1184 = vadd.xlane.f32.xlu0 %v1160_v47 }
 0x3ca   :  { %v1125_v56 = vpop.permute.xlu0 %1124 }
 0x3cb   :  { %v2334_v58 = vmul.f32 %v1125_v56, %v2212_v25  ;;  %v1874_v25 = vpop.eup %1873 }
 0x3cc   :  { %v803_v14 = vmul.f32 %v1874_v25, %v771_v37  ;;  %vm808_vm1 = vweird.f32 %v1874_v25 }
 0x3cd   :  { %v1167_v4 = vmul.f32 %v2334_v58, %v2334_v58  ;;  %v1151_v5 = vpack.c.bf16 %v2334_v58, %v2305_v19  ;;  %vm809_vm3 = vmor %vm807_vm2, %vm808_vm1 }
 0x3ce   :  { %v804_v44 = vsub.f32 1.0, %v803_v14 }
 0x3cf   :  { %1198 = vadd.xlane.f32.xlu1 %v1167_v4  ;;  %1044 = vperm.xlu2 %1795, %v800_v8  }
 0x3d0   :  { %1457 = vmatpush.bf16.msrb.mxu1 %v1151_v5  ;;  %1180 = vadd.xlane.f32.xlu0 %v1158_v29  ;;  %v805_v21 = vmul.f32 %v1874_v25, %v804_v44 }
 0x3d2   :  { %v806_v26 = vadd.f32 %v1874_v25, %v805_v21 }
 0x3d4   :  { %1458 = vmatpush.bf16.msrb.mxu1 %v1150_v13  ;;  %v810_v30 = vsel %vm809_vm3, %v1874_v25, %v806_v26 }
 0x3d5   :  { %v815_v57 = vsel %vm812_vm4, %v814_v22, %v810_v30 }
 0x3d8   :  { %1182 = vadd.xlane.f32.xlu0 %v1159_v20  ;;  %1459 = vmatpush.bf16.msrb.mxu1 %v1149_v40 }
 0x3dc   :  { %1460 = vmatpush.bf16.msrb.mxu1 %v1148_v0 }
 0x3e0   :  { %1176 = vadd.xlane.f32.xlu0 %v1156_v53  ;;  %1461 = vmatpush.bf16.msrb.mxu1 %v1147_v23 }
 0x3e4   :  { %1462 = vmatpush.bf16.msrb.mxu1 %v1146_v62 }
 0x3e8   :  { %1178 = vadd.xlane.f32.xlu0 %v1157_v31  ;;  %1463 = vmatpush.bf16.msrb.mxu1 %v1145_v17 }
 0x3e9   :  { %1049 = vperm.xlu1 %1794, %v815_v57  }
 0x3f0   :  { %1174 = vadd.xlane.f32.xlu0 %v1155_v33 }
 0x3f8   :  { %1186 = vadd.xlane.f32.xlu2 %v1161_v7 }
 0x413   :  { %1190 = vadd.xlane.f32.xlu1 %v1163_v12 }
 0x41a   :  { %v1195_v35 = vpop.xlane.xlu2 %1194 }
 0x41b   :  { %1172 = vadd.xlane.f32.xlu1 %v1154_v34  ;;  %v1213_v47 = vmax.f32 %v1195_v35, 1e-16 }
 0x41d   :  { %vm1352_vm15 = vweird.f32 %v1213_v47 }
 0x422   :  { %v1197_v3 = vpop.xlane.xlu2 %1196 }
 0x423   :  { %v1214_v42 = vmax.f32 %v1197_v3, 1e-16 }
 0x425   :  { %1875 = vrsqrt.f32 %v1214_v42  ;;  %vm1362_vm6 = vweird.f32 %v1214_v42 }
 0x42a   :  { %v1055_v36 = vpop.permute.xlu2 %1054  ;;  %v1193_v45 = vpop.xlane.xlu0 %1192 }
 0x42b   :  { %v2397_v38 = vmul.f32 %v1055_v36, %v2130_v6  ;;  %v1212_v46 = vmax.f32 %v1193_v45, 1e-16  ;;  %v1876_v48 = vpop.eup %1875 }
 0x42c   :  { %v1357_v6 = vmul.f32 %v1876_v48, %v1214_v42  ;;  %vm1363_vm5 = vweird.f32 %v1876_v48 }
 0x42d   :  { %v1153_v63 = vmul.f32 %v2397_v38, %v2397_v38  ;;  %1877 = vrsqrt.f32 %v1212_v46  ;;  %vm1364_vm8 = vmor %vm1362_vm6, %vm1363_vm5  ;;  %vm1342_vm13 = vweird.f32 %v1212_v46 }
 0x42e   :  { %1879 = vrsqrt.f32 %v1213_v47  ;;  %v1358_v51 = vmul.f32 %v1876_v48, %v1357_v6 }
 0x42f   :  { %1170 = vadd.xlane.f32.xlu0 %v1153_v63 }
 0x430   :  { %v1359_v27 = vmul.f32 0.5, %v1358_v51 }
 0x432   :  { %v1045_v39 = vpop.permute.xlu2 %1044  ;;  %v1360_v29 = vsub.f32 1.5, %v1359_v27  ;;  %v1189_v31 = vpop.xlane.xlu0 %1188 }
 0x433   :  { %v2402_v54 = vmul.f32 %v1045_v39, %v2118_v59  ;;  %v1878_v37 = vpop.eup %1877  ;;  %v1210_v39 = vmax.f32 %v1189_v31, 1e-16 }
 0x434   :  { %v1880_v56 = vpop.eup %1879  ;;  %v1337_v59 = vmul.f32 %v1878_v37, %v1212_v46  ;;  %v1361_v44 = vmul.f32 %v1876_v48, %v1360_v29  ;;  %vm1343_vm11 = vweird.f32 %v1878_v37 }
 0x435   :  { %v1400_v43 = vmul.f32 %v2402_v54, %v2402_v54  ;;  %v1347_v1 = vmul.f32 %v1880_v56, %v1213_v47  ;;  %vm1353_vm12 = vweird.f32 %v1880_v56  ;;  %vm1344_vm14 = vmor %vm1342_vm13, %vm1343_vm11  ;;  %vm1322_vm2 = vweird.f32 %v1210_v39 }
 0x436   :  { %v1338_v4 = vmul.f32 %v1878_v37, %v1337_v59  ;;  %v1365_v23 = vsel %vm1364_vm8, %v1876_v48, %v1361_v44  ;;  %vm1354_vm0 = vmor %vm1352_vm15, %vm1353_vm12 }
 0x437   :  { %1401 = vadd.xlane.f32.xlu2 %v1400_v43  ;;  %v1348_v8 = vmul.f32 %v1880_v56, %v1347_v1  ;;  %v1390_v28 = vmul.f32 %v1365_v23, %v2305_v19 }
 0x438   :  { %v1339_v13 = vmul.f32 0.5, %v1338_v4 }
 0x439   :  { %v1349_v20 = vmul.f32 0.5, %v1348_v8 }
 0x43a   :  { %v1340_v0 = vsub.f32 1.5, %v1339_v13  ;;  %v1185_v36 = vpop.xlane.xlu0 %1184 }
 0x43b   :  { %v1350_v53 = vsub.f32 1.5, %v1349_v20 }
 0x43c   :  { %v1341_v50 = vmul.f32 %v1878_v37, %v1340_v0 }
 0x43d   :  { %v1351_v17 = vmul.f32 %v1880_v56, %v1350_v53 }
 0x43e   :  { %v1345_v57 = vsel %vm1344_vm14, %v1878_v37, %v1341_v50 }
 0x43f   :  { %v1355_v12 = vsel %vm1354_vm0, %v1880_v56, %v1351_v17  ;;  %v1388_v34 = vmul.f32 %v1345_v57, %v2312_v24  ;;  %v2419_v24 = vmax.f32 %v1185_v36, 1e-16 }
 0x440   :  { %v1389_v35 = vmul.f32 %v1355_v12, %v2296_v9 }
 0x441   :  { %vm1302_vm11 = vweird.f32 %v2419_v24 }
 0x442   :  { %v1199_v49 = vpop.xlane.xlu1 %1198  ;;  %v1398_v3 = vpack.c.bf16 %v1389_v35, %v1388_v34 }
 0x443   :  { %v1215_v41 = vmax.f32 %v1199_v49, 1e-16  ;;  %v1181_v63 = vpop.xlane.xlu0 %1180 }
 0x444   :  { %v2431_v37 = vmax.f32 %v1181_v63, 1e-16 }
 0x445   :  { %1881 = vrsqrt.f32 %v1215_v41  ;;  %vm1372_vm9 = vweird.f32 %v1215_v41 }
 0x446   :  { %1883 = vrsqrt.f32 %v1210_v39 }
 0x44b   :  { %v1882_v5 = vpop.eup %1881 }
 0x44c   :  { %v1367_v25 = vmul.f32 %v1882_v5, %v1215_v41  ;;  %vm1373_vm7 = vweird.f32 %v1882_v5  ;;  %v2421_v45 = vpop.eup %1883 }
 0x44d   :  { %vm1374_vm10 = vmor %vm1372_vm9, %vm1373_vm7  ;;  %v1317_v9 = vmul.f32 %v2421_v45, %v1210_v39  ;;  %vm1323_vm1 = vweird.f32 %v2421_v45 }
 0x44e   :  { %v1368_v14 = vmul.f32 %v1882_v5, %v1367_v25  ;;  %vm2462_vm3 = vmor %vm1322_vm2, %vm1323_vm1  ;;  %vm1282_vm1 = vweird.f32 %v2431_v37 }
 0x44f   :  { %v1318_v49 = vmul.f32 %v2421_v45, %v1317_v9 }
 0x450   :  { %v1369_v40 = vmul.f32 0.5, %v1368_v14 }
 0x451   :  { %v1319_v1 = vmul.f32 0.5, %v1318_v49 }
 0x452   :  { %v1370_v21 = vsub.f32 1.5, %v1369_v40 }
 0x453   :  { %v1320_v25 = vsub.f32 1.5, %v1319_v1 }
 0x454   :  { %v1371_v26 = vmul.f32 %v1882_v5, %v1370_v21 }
 0x455   :  { %v1321_v23 = vmul.f32 %v2421_v45, %v1320_v25 }
 0x456   :  { %v1375_v62 = vsel %vm1374_vm10, %v1882_v5, %v1371_v26 }
 0x457   :  { %v1391_v30 = vmul.f32 %v1375_v62, %v2334_v58  ;;  %v1325_v34 = vsel %vm2462_vm3, %v2421_v45, %v1321_v23 }
 0x459   :  { %v1399_v22 = vpack.c.bf16 %v1391_v30, %v1390_v28 }
 0x45b   :  { %v1050_v33 = vpop.permute.xlu1 %1049  ;;  %1416 = vmatpush.bf16.xpose.msrb.mxu0 %v1399_v22 }
 0x45c   :  { %v2409_v7 = vmul.f32 %v1050_v33, %v2121_v60  ;;  %v1183_v60 = vpop.xlane.xlu0 %1182 }
 0x45d   :  { %v2426_v47 = vmax.f32 %v1183_v60, 1e-16 }
 0x45e   :  { %v1152_v19 = vmul.f32 %v2409_v7, %v2409_v7  ;;  %v1144_v58 = vpack.c.bf16 %v2397_v38, %v2409_v7 }
 0x45f   :  { %vm1292_vm15 = vweird.f32 %v2426_v47 }
 0x460   :  { %1168 = vadd.xlane.f32.xlu1 %v1152_v19  ;;  %1464 = vmatpush.bf16.msrb.mxu1 %v1144_v58 }
 0x463   :  { %1417 = vmatpush.bf16.xpose.msrb.mxu0 %v1398_v3 }
 0x464   :  { %v1177_v46 = vpop.xlane.xlu0 %1176 }
 0x465   :  { %v2446_v13 = vmax.f32 %v1177_v46, 1e-16 }
 0x46b   :  { %v1187_v42 = vpop.xlane.xlu2 %1186 }
 0x46c   :  { %v2417_v43 = vmax.f32 %v1187_v42, 1e-16  ;;  %v1179_v56 = vpop.xlane.xlu0 %1178  ;;  %v1386_v42 = vmul.f32 %v1325_v34, %v2321_v32 }
 0x46d   :  { %v2441_v4 = vmax.f32 %v1179_v56, 1e-16 }
 0x46e   :  { %1885 = vrsqrt.f32 %v2417_v43  ;;  %vm1312_vm9 = vweird.f32 %v2417_v43 }
 0x46f   :  { %1887 = vrsqrt.f32 %v2419_v24 }
 0x470   :  { %1889 = vrsqrt.f32 %v2426_v47 }
 0x474   :  { %v2428_v6 = vpop.eup %1885  ;;  %v1175_v50 = vpop.xlane.xlu0 %1174 }
 0x475   :  { %v2434_v51 = vpop.eup %1887  ;;  %v1307_v59 = vmul.f32 %v2428_v6, %v2417_v43  ;;  %v2468_v12 = vmax.f32 %v1175_v50, 1e-16  ;;  %vm1313_vm7 = vweird.f32 %v2428_v6 }
 0x476   :  { %v1297_v27 = vmul.f32 %v2434_v51, %v2419_v24  ;;  %v2443_v5 = vpop.eup %1889  ;;  %vm1303_vm8 = vweird.f32 %v2434_v51  ;;  %vm1314_vm10 = vmor %vm1312_vm9, %vm1313_vm7  ;;  %vm1262_vm7 = vweird.f32 %v2446_v13 }
 0x477   :  { %v1308_v8 = vmul.f32 %v2428_v6, %v1307_v59  ;;  %v1287_v44 = vmul.f32 %v2443_v5, %v2426_v47  ;;  %vm1304_vm12 = vmor %vm1302_vm11, %vm1303_vm8  ;;  %vm1293_vm13 = vweird.f32 %v2443_v5 }
 0x478   :  { %v1298_v14 = vmul.f32 %v2434_v51, %v1297_v27  ;;  %vm1294_vm0 = vmor %vm1292_vm15, %vm1293_vm13  ;;  %vm1252_vm13 = vweird.f32 %v2468_v12 }
 0x479   :  { %v1309_v0 = vmul.f32 0.5, %v1308_v8  ;;  %v1288_v30 = vmul.f32 %v2443_v5, %v1287_v44 }
 0x47a   :  { %v1299_v26 = vmul.f32 0.5, %v1298_v14 }
 0x47b   :  { %v1310_v22 = vsub.f32 1.5, %v1309_v0  ;;  %v1289_v36 = vmul.f32 0.5, %v1288_v30 }
 0x47c   :  { %v1300_v19 = vsub.f32 1.5, %v1299_v26 }
 0x47d   :  { %v1311_v60 = vmul.f32 %v2428_v6, %v1310_v22 }
 0x47f   :  { %v1315_v59 = vsel %vm1314_vm10, %v2428_v6, %v1311_v60 }
 0x480   :  { %v1385_v8 = vmul.f32 %v1315_v59, %v2354_v15 }
 0x486   :  { %v1191_v48 = vpop.xlane.xlu1 %1190 }
 0x487   :  { %v1211_v41 = vmax.f32 %v1191_v48, 1e-16  ;;  %v1301_v48 = vmul.f32 %v2434_v51, %v1300_v19 }
 0x489   :  { %1891 = vrsqrt.f32 %v1211_v41  ;;  %vm1332_vm5 = vweird.f32 %v1211_v41  ;;  %v1305_v43 = vsel %vm1304_vm12, %v2434_v51, %v1301_v48 }
 0x48a   :  { %1893 = vrsqrt.f32 %v2431_v37  ;;  %v1384_v25 = vmul.f32 %v1305_v43, %v2326_v11 }
 0x48b   :  { %1895 = vrsqrt.f32 %v2441_v4 }
 0x48c   :  { %1897 = vrsqrt.f32 %v2446_v13  ;;  %v1396_v15 = vpack.c.bf16 %v1385_v8, %v1384_v25 }
 0x48e   :  { %v1173_v53 = vpop.xlane.xlu1 %1172 }
 0x48f   :  { %v1892_v29 = vpop.eup %1891  ;;  %v2460_v31 = vmax.f32 %v1173_v53, 1e-16 }
 0x490   :  { %v1327_v20 = vmul.f32 %v1892_v29, %v1211_v41  ;;  %v2449_v40 = vpop.eup %1893  ;;  %vm1333_vm4 = vweird.f32 %v1892_v29  ;;  %v1290_v41 = vsub.f32 1.5, %v1289_v36 }
 0x491   :  { %v1277_v62 = vmul.f32 %v2449_v40, %v2431_v37  ;;  %v2466_v33 = vpop.eup %1895  ;;  %vm1334_vm6 = vmor %vm1332_vm5, %vm1333_vm4  ;;  %1899 = vrsqrt.f32 %v2460_v31  ;;  %vm1283_vm14 = vweird.f32 %v2449_v40  ;;  %vm1272_vm5 = vweird.f32 %v2441_v4 }
 0x492   :  { %v1328_v21 = vmul.f32 %v1892_v29, %v1327_v20  ;;  %v2474_v3 = vpop.eup %1897  ;;  %v1267_v63 = vmul.f32 %v2466_v33, %v2441_v4  ;;  %1901 = vrsqrt.f32 %v2468_v12  ;;  %v1291_v6 = vmul.f32 %v2443_v5, %v1290_v41  ;;  %vm1284_vm2 = vmor %vm1282_vm1, %vm1283_vm14 }
 0x493   :  { %v1278_v58 = vmul.f32 %v2449_v40, %v1277_v62  ;;  %v1257_v9 = vmul.f32 %v2474_v3, %v2446_v13  ;;  %vm1273_vm3 = vweird.f32 %v2466_v33  ;;  %vm1263_vm4 = vweird.f32 %v2474_v3 }
 0x494   :  { %v1329_v28 = vmul.f32 0.5, %v1328_v21  ;;  %v1268_v56 = vmul.f32 %v2466_v33, %v1267_v63  ;;  %v1295_v21 = vsel %vm1294_vm0, %v2443_v5, %v1291_v6  ;;  %vm1264_vm8 = vmor %vm1262_vm7, %vm1263_vm4  ;;  %vm1242_vm11 = vweird.f32 %v2460_v31 }
 0x495   :  { %v1279_v46 = vmul.f32 0.5, %v1278_v58  ;;  %v1258_v1 = vmul.f32 %v2474_v3, %v1257_v9  ;;  %v1383_v47 = vmul.f32 %v1295_v21, %v2344_v61 }
 0x496   :  { %v1330_v57 = vsub.f32 1.5, %v1329_v28  ;;  %v1269_v24 = vmul.f32 0.5, %v1268_v56 }
 0x497   :  { %v1900_v32 = vpop.eup %1899  ;;  %v1259_v14 = vmul.f32 0.5, %v1258_v1 }
 0x498   :  { %v1331_v35 = vmul.f32 %v1892_v29, %v1330_v57  ;;  %v1902_v27 = vpop.eup %1901  ;;  %v1270_v44 = vsub.f32 1.5, %v1269_v24  ;;  %vm1243_vm9 = vweird.f32 %v1900_v32 }
 0x499   :  { %v1247_v20 = vmul.f32 %v1902_v27, %v2468_v12  ;;  %v1260_v53 = vsub.f32 1.5, %v1259_v14  ;;  %vm1253_vm10 = vweird.f32 %v1902_v27  ;;  %vm1244_vm12 = vmor %vm1242_vm11, %vm1243_vm9 }
 0x49a   :  { %v1335_v39 = vsel %vm1334_vm6, %v1892_v29, %v1331_v35  ;;  %v1237_v29 = vmul.f32 %v1900_v32, %v2460_v31  ;;  %v1271_v62 = vmul.f32 %v2466_v33, %v1270_v44  ;;  %vm1274_vm6 = vmor %vm1272_vm5, %vm1273_vm3 }
 0x49b   :  { %v1387_v45 = vmul.f32 %v1335_v39, %v2348_v10  ;;  %v1280_v10 = vsub.f32 1.5, %v1279_v46  ;;  %v1248_v23 = vmul.f32 %v1902_v27, %v1247_v20  ;;  %v1261_v5 = vmul.f32 %v2474_v3, %v1260_v53  ;;  %vm1254_vm14 = vmor %vm1252_vm13, %vm1253_vm10 }
 0x49c   :  { %v1238_v0 = vmul.f32 %v1900_v32, %v1237_v29  ;;  %v1275_v61 = vsel %vm1274_vm6, %v2466_v33, %v1271_v62  ;;  %vm1572_vm13 = vcmask 57344  }
 0x49d   :  { %v1397_v49 = vpack.c.bf16 %v1387_v45, %v1386_v42  ;;  %v1281_v51 = vmul.f32 %v2449_v40, %v1280_v10  ;;  %v1249_v37 = vmul.f32 0.5, %v1248_v23  ;;  %v1265_v17 = vsel %vm1264_vm8, %v2474_v3, %v1261_v5 }
 0x49e   :  { %v1239_v26 = vmul.f32 0.5, %v1238_v0  ;;  %v1380_v4 = vmul.f32 %v1265_v17, %v2362_v2 }
 0x49f   :  { %1418 = vmatpush.bf16.xpose.msrb.mxu0 %v1397_v49  ;;  %v1285_v11 = vsel %vm1284_vm2, %v2449_v40, %v1281_v51  ;;  %v1250_v30 = vsub.f32 1.5, %v1249_v37  ;;  %v1430_v51 = vlaneseq  ;;  %v1782_v37 = vld [vmem:[#allocation2 + $0x118] sm:$0xff] }
 0x4a0   :  { %v1382_v50 = vmul.f32 %v1285_v11, %v2331_v55  ;;  %v1240_v40 = vsub.f32 1.5, %v1239_v26  ;;  %v1381_v55 = vmul.f32 %v1275_v61, %v2368_v52  ;;  %v1785_v26 = vld [vmem:[#allocation2 + $0x130] sm:$0xff] }
 0x4a1   :  { %v1251_v57 = vmul.f32 %v1902_v27, %v1250_v30 }
 0x4a2   :  { %v1395_v28 = vpack.c.bf16 %v1383_v47, %v1382_v50  ;;  %v1241_v22 = vmul.f32 %v1900_v32, %v1240_v40  ;;  %v1394_v13 = vpack.c.bf16 %v1381_v55, %v1380_v4  ;;  %v1171_v35 = vpop.xlane.xlu0 %1170  ;;  %v1786_v47 = vld [vmem:[#allocation2 + $0x138] sm:$0xff]  ;;  %v1783_v50 = vld [vmem:[#allocation2 + $0x120] sm:$0xff]  ;;  %v1781_v40 = vld [vmem:[#allocation2 + $0x110] sm:$0xff] }
 0x4a3   :  { %v1255_v34 = vsel %vm1254_vm14, %v1902_v27, %v1251_v57  ;;  %v1201_v2 = vmax.f32 %v1171_v35, 1e-16  ;;  %1538 = vmatpush.bf16.msrb.mxu2 %v1786_v47 }
 0x4a4   :  { %v1245_v33 = vsel %vm1244_vm12, %v1900_v32, %v1241_v22  ;;  %v1379_v52 = vmul.f32 %v1255_v34, %v2376_v18  ;;  %v1780_v22 = vld [vmem:[#allocation2 + $0x108] sm:$0xff] }
 0x4a5   :  { %v1378_v19 = vmul.f32 %v1245_v33, %v2382_v16  ;;  %1903 = vrsqrt.f32 %v1201_v2  ;;  %vm1232_vm0 = vweird.f32 %v1201_v2 }
 0x4a7   :  { %1419 = vmatpush.bf16.xpose.msrb.mxu0 %v1396_v15  ;;  %v1393_v58 = vpack.c.bf16 %v1379_v52, %v1378_v19  ;;  %v1431_v15 = vand.u32 127, %v1430_v51  ;;  %1539 = vmatpush.bf16.msrb.mxu2 %v1785_v26  ;;  %v1779_v52 = vld [vmem:[#allocation2 + $0x100] sm:$0xff] }
 0x4a9   :  { %vm1432_vm8 = vcmp.lt.s32.totalorder %v1431_v15, 8 }
 0x4aa   :  { %v1402_v3 = vpop.xlane.xlu2 %1401 }
 0x4ab   :  { %v1403_v31 = vmax.f32 %v1402_v3, 1e-16  ;;  %v1904_v36 = vpop.eup %1903  ;;  %v108_v3 = vld [vmem:[%s2541_s2 + $0x9] sm:$0x1] }
 0x4ac   :  { %v1227_v63 = vmul.f32 %v1904_v36, %v1201_v2  ;;  %vm1233_vm15 = vweird.f32 %v1904_v36 }
 0x4ad   :  { %1905 = vrsqrt.f32 %v1403_v31  ;;  %vm1234_vm2 = vmor %vm1232_vm0, %vm1233_vm15  ;;  %vm1410_vm6 = vweird.f32 %v1403_v31 }
 0x4ae   :  { %v1228_v42 = vmul.f32 %v1904_v36, %v1227_v63 }
 0x4af   :  { %1420 = vmatpush.bf16.xpose.msrb.mxu0 %v1395_v28 }
 0x4b0   :  { %v1229_v46 = vmul.f32 0.5, %v1228_v42  ;;  %v1487_v42 = vld [vmem:[%s2541_s2 + $0x8] sm:$0x1] }
 0x4b2   :  { %v1230_v18 = vsub.f32 1.5, %v1229_v46  ;;  %v1552_v46 = vpack.c.bf16 %v1487_v42, %v1487_v42 }
 0x4b3   :  { %v1906_v39 = vpop.eup %1905 }
 0x4b4   :  { %v1405_v45 = vmul.f32 %v1906_v39, %v1403_v31  ;;  %v1231_v59 = vmul.f32 %v1904_v36, %v1230_v18  ;;  %vm1411_vm4 = vweird.f32 %v1906_v39  ;;  %v1969_v31 = vmov 1  }
 0x4b5   :  { %vm1412_vm7 = vmor %vm1410_vm6, %vm1411_vm4  ;;  %1796 = vset.pattern.permute.xlu2 %v1969_v31  ;;  %1797 = vset.pattern.permute.xlu0 %v1969_v31 }
 0x4b6   :  { %v1406_v16 = vmul.f32 %v1906_v39, %v1405_v45  ;;  %v1235_v43 = vsel %vm1234_vm2, %v1904_v36, %v1231_v59  ;;  %1556 = vperm.xlu2 %1796, %v108_v3   ;;  %v1806_v36 = vld [vmem:[%s2541_s2 + $0x7] ss:$0 sm:$0xff] }
 0x4b7   :  { %1421 = vmatpush.bf16.xpose.msrb.mxu0 %v1394_v13  ;;  %v1377_v29 = vmul.f32 %v1235_v43, %v2397_v38 }
 0x4b8   :  { %v1407_v49 = vmul.f32 0.5, %v1406_v16 }
 0x4ba   :  { %v1408_v32 = vsub.f32 1.5, %v1407_v49 }
 0x4bc   :  { %v1409_v27 = vmul.f32 %v1906_v39, %v1408_v32 }
 0x4be   :  { %v1413_v25 = vsel %vm1412_vm7, %v1906_v39, %v1409_v27 }
 0x4bf   :  { %1422 = vmatpush.bf16.xpose.msrb.mxu0 %v1393_v58  ;;  %v1414_v14 = vmul.f32 %v1413_v25, %v2402_v54  ;;  %v1784_v54 = vld [vmem:[#allocation2 + $0x128] sm:$0xff] }
 0x4c0   :  { %1540 = vmatpush.bf16.msrb.mxu2 %v1784_v54 }
 0x4c1   :  { %v1415_v20 = vpack.c.bf16 %v1414_v14, %v1414_v14 }
 0x4c4   :  { %1541 = vmatpush.bf16.msrb.mxu2 %v1783_v50 }
 0x4c8   :  { %1542 = vmatpush.bf16.msrb.mxu2 %v1782_v37 }
 0x4cc   :  { %1543 = vmatpush.bf16.msrb.mxu2 %v1781_v40 }
 0x4d0   :  { %1544 = vmatpush.bf16.msrb.mxu2 %v1780_v22 }
 0x4d3   :  { %v1169_v12 = vpop.xlane.xlu1 %1168 }
 0x4d4   :  { %v1200_v60 = vmax.f32 %v1169_v12, 1e-16  ;;  %1545 = vmatpush.bf16.msrb.mxu2 %v1779_v52 }
 0x4d6   :  { %1907 = vrsqrt.f32 %v1200_v60  ;;  %vm1222_vm3 = vweird.f32 %v1200_v60 }
 0x4dc   :  { %v1908_v9 = vpop.eup %1907 }
 0x4dd   :  { %v1217_v48 = vmul.f32 %v1908_v9, %v1200_v60  ;;  %vm1223_vm1 = vweird.f32 %v1908_v9 }
 0x4de   :  { %vm1224_vm5 = vmor %vm1222_vm3, %vm1223_vm1 }
 0x4df   :  { %v1218_v41 = vmul.f32 %v1908_v9, %v1217_v48 }
 0x4e1   :  { %v1219_v56 = vmul.f32 0.5, %v1218_v41 }
 0x4e3   :  { %v1220_v10 = vsub.f32 1.5, %v1219_v56 }
 0x4e5   :  { %v1221_v1 = vmul.f32 %v1908_v9, %v1220_v10 }
 0x4e7   :  { %v1225_v8 = vsel %vm1224_vm5, %v1908_v9, %v1221_v1 }
 0x4e8   :  { %v1376_v24 = vmul.f32 %v1225_v8, %v2409_v7 }
 0x4ea   :  { %v1392_v6 = vpack.c.bf16 %v1377_v29, %v1376_v24 }
 0x4ec   :  { %1423 = vmatpush.bf16.xpose.msrb.mxu0 %v1392_v6 }
 0x4f3   :  { %1424 = vmatmul.bf16.vlgmr.msrb.gmra.mxu0 %v1415_v20 }
 0x510   :  { %v1557_v16 = vpop.permute.xlu2 %1556 }
 0x570   :  { %v1425_v44 = vpop.f32.mrf.mxu0 }
 0x571   :  { %v1429_v0 = vmul.f32 10.0, %v1425_v44 }
 0x573   :  { %v1433_v21 = vsel %vm1432_vm8, %v1429_v0, -1e+30 }
 0x574   :  { %1434 = vmax.xlane.f32.xlu1 %v1433_v21 }
 0x578   :  { %v1427_v53 = vpop.f32.mrf.mxu0 }
 0x5e7   :  { %v1435_v23 = vpop.xlane.xlu1 %1434 }
 0x5e8   :  { %v1436_v7 = vsub.f32 %v1433_v21, %v1435_v23 }
 0x5ea   :  { %v1437_v11 = vmul.f32 1.442695, %v1436_v7 }
 0x5ec   :  { %1909 = vpow2.f32 %v1437_v11 }
 0x5f2   :  { %v1910_v38 = vpop.eup %1909 }
 0x5f3   :  { %1439 = vadd.xlane.f32.xlu0 %v1910_v38 }
 0x666   :  { %v1440_v62 = vpop.xlane.xlu0 %1439 }
 0x667   :  { %1911 = vrcp.f32 %v1440_v62  ;;  %v1452_v30 = vand.u32 2147483648, %v1440_v62  ;;  %v1450_v55 = vand.u32 2147483647, %v1440_v62  ;;  %vm1446_vm10 = vweird.f32 %v1440_v62 }
 0x669   :  { %v1453_v57 = vor.u32 1.1754944e-38, %v1452_v30  ;;  %vm1451_vm12 = vcmp.eq.f32.partialorder %v1450_v55, 8.507059e+37 }
 0x66d   :  { %v1912_v5 = vpop.eup %1911 }
 0x66e   :  { %v1442_v28 = vmul.f32 %v1912_v5, %v1440_v62  ;;  %vm1447_vm9 = vweird.f32 %v1912_v5 }
 0x66f   :  { %vm1448_vm11 = vmor %vm1446_vm10, %vm1447_vm9 }
 0x670   :  { %v1443_v61 = vsub.f32 1.0, %v1442_v28 }
 0x672   :  { %v1444_v17 = vmul.f32 %v1912_v5, %v1443_v61 }
 0x674   :  { %v1445_v4 = vadd.f32 %v1912_v5, %v1444_v17 }
 0x676   :  { %v1449_v13 = vsel %vm1448_vm11, %v1912_v5, %v1445_v4 }
 0x677   :  { %v1454_v33 = vsel %vm1451_vm12, %v1453_v57, %v1449_v13 }
 0x678   :  { %v1455_v34 = vmul.f32 %v1910_v38, %v1454_v33 }
 0x67a   :  { %v1456_v19 = vpack.c.bf16 %v1455_v34, %v1455_v34 }
 0x67c   :  { %1465 = vmatmul.bf16.vlgmr.msrb.gmra.mxu1 %v1456_v19 }
 0x6f9   :  { %v1466_v58 = vpop.f32.mrf.mxu1 }
 0x6fa   :  { %v1488_v35 = vpack.c.bf16 %v1466_v58, %v1466_v58 }
 0x6fc   :  { %1546 = vmatmul.bf16.vlgmr.msrb.gmra.mxu2 %v1488_v35 }
 0x701   :  { %v1468_v2 = vpop.f32.mrf.mxu1 }
 0x77f   :  { %v1547_v63 = vpop.f32.mrf.mxu2 }
 0x780   :  { %v1548_v39 = vadd.f32 %v1806_v36, %v1547_v63 }
 0x782   :  { %v1551_v12 = vmax.f32 %v1548_v39, 0.0 }
 0x784   :  { %v1553_v60 = vpack.c.bf16 %v1551_v12, %v1551_v12 }
 0x786   :  { %1566 = vmatpush.bf16.xpose.msra.mxu0 %v1553_v60 }
 0x787   :  { %v1549_v45 = vpop.f32.mrf.mxu2 }
 0x78d   :  { %1567 = vmatmul.bf16.vlgmr.msra.gmra.mxu0 %v1552_v46 }
 0x80a   :  { %v1568_v9 = vpop.f32.mrf.mxu0 }
 0x80b   :  { %v1569_v18 = vadd.f32 %v1568_v9, %v1557_v16 }
 0x80d   :  { %1573 = vst.msk [vmem:[#allocation5] sm:$0x1] %vm1572_vm13, %v1569_v18 }
 0x80e   :  { %1584 = dma.vmem_to_hbm [thread:$0]  %s1580_s19, 16, %s1582_s22, [#allocation4]  }
 0x812   :  { %v1570_v48 = vpop.f32.mrf.mxu0 }
 0x813   :  { %1963 = dma.done.wait [#allocation4], 16  }
 0x814   :  { %1964 = vsyncadd [#allocation4], 4294967280 }
 0x815   :  { %1589 = vsyncpa [#allocation3], 1 }
 0x816   :  { %1590 = vsyncpa [#allocation4], 1 }

</bundles_post_ra>
